<compile_context>
chip_gen: v5e
topology: v5e:2x2
jax: 0.10.0
libtpu: 0.0.40
codegen_flags: <defaults>
</compile_context>

<pallas_src>
import functools

import jax
import jax.numpy as jnp
from jax import lax
from jax.experimental import pallas as pl
from jax.experimental.pallas import tpu as pltpu

EPS = 1e-5


def _round_up(n, m):
    return ((n + m - 1) // m) * m


def _vmem_capacity_bytes():
    """Physical VMEM of the local TPU generation; conservative fallback (v7x floor)."""
    try:
        cap = getattr(pltpu.get_tpu_info(), "vmem_capacity_bytes", None)
        if cap:
            return int(cap)
    except Exception:
        pass
    return 64 * 1024 * 1024


def _conv3(x2d, w_ref, b_col, edges, ltot):
    """3-tap 'same' Conv1d on a (C, Ltot) slab of lane-folded samples.

    Three accumulating MXU matmuls (one per tap), f32 accumulation.  Shifted operands are
    built with pltpu.roll (XLU slot); sample-boundary leaks are zeroed with the precomputed
    edge masks, or are already zero because every sample ends in >=1 lane of zero padding.
    """
    zero = jnp.zeros((), x2d.dtype)
    x_m1 = pltpu.roll(x2d, 1, axis=1)             # reads x[l-1]
    x_p1 = pltpu.roll(x2d, ltot - 1, axis=1)      # reads x[l+1]
    if edges is not None:
        left, right = edges
        x_m1 = jnp.where(left, zero, x_m1)
        x_p1 = jnp.where(right, zero, x_p1)
    y = jnp.dot(w_ref[0], x_m1, preferred_element_type=jnp.float32)
    y = y + jnp.dot(w_ref[1], x2d, preferred_element_type=jnp.float32)
    y = y + jnp.dot(w_ref[2], x_p1, preferred_element_type=jnp.float32)
    return y + b_col


def _double_conv_kernel(x_ref, w1_ref, b1_ref, g1_ref, be1_ref,
                        w2_ref, b2_ref, g2_ref, be2_ref,
                        out_ref,
                        sum1_s, ssq1_s, sum2_s, ssq2_s,
                        sc1_s, sh1_s, sc2_s, sh2_s,
                        *, l_valid, lp, b_tile, n_valid, n_pad, inv_count, mm_dtype):
    phase = pl.program_id(0)   # 0: conv1 stats | 1: bn1+relu+conv2 stats | 2: bn2+relu+store
    j = pl.program_id(1)       # batch-tile index (b_tile samples per step)
    ltot = x_ref.shape[1]      # = b_tile * lp

    # ---- masks: built ONCE per step on a single (1, Ltot) row, broadcast inside where ----
    need_edges = (l_valid == lp)                       # rolls can only leak when L fills Lp
    need_valid = (l_valid < lp) or (n_pad > n_valid)   # L tail padding / padded samples
    edges, valid = None, None
    if need_edges or need_valid:
        lane = lax.broadcasted_iota(jnp.int32, (1, ltot), 1)
        if lp & (lp - 1) == 0:
            lane_mod = jnp.bitwise_and(lane, lp - 1)
        else:
            lane_mod = lax.rem(lane, jnp.int32(lp))
        if need_edges:
            edges = (lane_mod == 0, lane_mod == lp - 1)
        if need_valid:
            valid_lanes = jnp.minimum(n_valid - j * b_tile, b_tile) * lp
            valid = jnp.logical_and(lane_mod < l_valid, lane < valid_lanes)

    def mask_valid(y):
        return y if valid is None else jnp.where(valid, y, 0.0)

    def conv1():
        return _conv3(x_ref[...], w1_ref, b1_ref[...], edges, ltot)

    def conv2_from_conv1():
        # Recompute conv1 (cheap: MXU is far from saturated) instead of storing y1.
        h1 = jnp.maximum(conv1() * sc1_s[...] + sh1_s[...], 0.0)
        h1 = mask_valid(h1).astype(mm_dtype)           # conv2 taps must see zero padding
        return _conv3(h1, w2_ref, b2_ref[...], edges, ltot)

    # ---- phase 0: conv1, accumulate BN1 sum / sum-of-squares ------------------------------
    @pl.when(jnp.logical_and(phase == 0, j == 0))
    def _init_stats():
        for s in (sum1_s, ssq1_s, sum2_s, ssq2_s):
            s[...] = jnp.zeros_like(s)

    @pl.when(phase == 0)
    def _phase0():
        y1 = mask_valid(conv1())
        sum1_s[...] = sum1_s[...] + jnp.sum(y1, axis=1, keepdims=True)
        ssq1_s[...] = ssq1_s[...] + jnp.sum(y1 * y1, axis=1, keepdims=True)

    # ---- phase 1: fold BN1 once, then bn1+relu+conv2, accumulate BN2 stats ----------------
    @pl.when(jnp.logical_and(phase == 1, j == 0))
    def _fold_bn1():
        mean = sum1_s[...] * inv_count                      # biased training-mode BN, f32
        var = ssq1_s[...] * inv_count - mean * mean
        sc = g1_ref[...] * lax.rsqrt(var + EPS)
        sc1_s[...] = sc
        sh1_s[...] = be1_ref[...] - mean * sc

    @pl.when(phase == 1)
    def _phase1():
        y2 = mask_valid(conv2_from_conv1())
        sum2_s[...] = sum2_s[...] + jnp.sum(y2, axis=1, keepdims=True)
        ssq2_s[...] = ssq2_s[...] + jnp.sum(y2 * y2, axis=1, keepdims=True)

    # ---- phase 2: fold BN2 once, recompute chain, bn2+relu, lane-dense store --------------
    @pl.when(jnp.logical_and(phase == 2, j == 0))
    def _fold_bn2():
        mean = sum2_s[...] * inv_count
        var = ssq2_s[...] * inv_count - mean * mean
        sc = g2_ref[...] * lax.rsqrt(var + EPS)
        sc2_s[...] = sc
        sh2_s[...] = be2_ref[...] - mean * sc

    @pl.when(phase == 2)
    def _phase2():
        out = jnp.maximum(conv2_from_conv1() * sc2_s[...] + sh2_s[...], 0.0)
        out_ref[...] = out.astype(out_ref.dtype)


def double_conv(x, params, *, matmul_dtype=jnp.float32):
    """x: (N, in_ch, L) float32.  Returns (N, out_ch, L) float32.

    matmul_dtype=jnp.bfloat16 is recommended on all generations (MXU-native, half the x DMA);
    all BatchNorm / ReLU math stays f32 regardless.
    """
    n, cin, l = x.shape
    w1, w2 = params["w1"], params["w2"]
    cout = w1.shape[0]
    out_dtype = x.dtype
    itemsize = jnp.dtype(matmul_dtype).itemsize

    c_align = 16 if matmul_dtype == jnp.bfloat16 else 8
    cinp = _round_up(max(cin, c_align), c_align)
    coutp = _round_up(max(cout, c_align), c_align)
    lp = _round_up(max(l, 128), 128)
    # TODO(synk): for L so large that one (C, lp) slab overflows the per-step budget, add an
    # L-tile grid axis with 1-element halos instead of a single lane-folded slab per sample.

    # ---- batch folding: B_TILE samples share one grid step / one MXU weight stream --------
    per_lane_bytes = (2 * cinp * itemsize + 2 * coutp * 4      # double-buffered x / out
                      + 6 * max(cinp, coutp) * 4)              # in-flight f32 temporaries
    b_tile = max(1, min(4096 // lp, (24 << 20) // (per_lane_bytes * lp)))
    b_tile = max(1, min(b_tile, n))
    n_pad = _round_up(n, b_tile)
    n_tiles = n_pad // b_tile
    ltot = b_tile * lp

    # ---- wrapper-side layout plumbing (free): lane-fold samples, pack weights -------------
    xp = jnp.zeros((n_pad, cinp, lp), jnp.float32).at[:n, :cin, :l].set(x)
    xp = jnp.transpose(xp, (1, 0, 2)).reshape(cinp, n_pad * lp).astype(matmul_dtype)

    def pack_w(w, ci, cip):
        # PyTorch Conv1d layout (cout, ci, 3) -> (3, coutp, cip): one (coutp, cip) slab/tap.
        wpad = jnp.zeros((coutp, cip, 3), jnp.float32).at[:cout, :ci, :].set(w)
        return jnp.transpose(wpad, (2, 0, 1)).astype(matmul_dtype)

    def col(v):   # (cout,) -> (coutp, 1) f32, padded channels get 0
        return jnp.zeros((coutp, 1), jnp.float32).at[:cout, 0].set(v)

    w1p, w2p = pack_w(w1, cin, cinp), pack_w(w2, cout, coutp)
    b1c, g1c, be1c = col(params["b1"]), col(params["g1"]), col(params["be1"])
    b2c, g2c, be2c = col(params["b2"]), col(params["g2"]), col(params["be2"])

    kernel = functools.partial(
        _double_conv_kernel, l_valid=l, lp=lp, b_tile=b_tile, n_valid=n, n_pad=n_pad,
        inv_count=1.0 / float(n * l), mm_dtype=matmul_dtype)

    x_spec = pl.BlockSpec((cinp, ltot), lambda p, j: (0, j))
    out_spec = pl.BlockSpec((coutp, ltot), lambda p, j: (0, jnp.where(p == 2, j, 0)))
    small = pl.BlockSpec(memory_space=pltpu.MemorySpace.VMEM)   # tiny params, loaded once

    step_bytes = (2 * cinp * ltot * itemsize + 2 * coutp * ltot * 4
                  + 6 * max(cinp, coutp) * ltot * 4
                  + (w1p.size + w2p.size) * itemsize
                  + 16 * coutp * 128 * 4 + (1 << 20))
    vmem_limit = int(min(max(2 * step_bytes, 32 << 20),
                         _vmem_capacity_bytes() - (8 << 20)))

    out2d = pl.pallas_call(
        kernel,
        out_shape=jax.ShapeDtypeStruct((coutp, n_pad * lp), out_dtype),
        grid_spec=pltpu.PrefetchScalarGridSpec(
            num_scalar_prefetch=0,
            grid=(3, n_tiles),
            in_specs=[x_spec, small, small, small, small, small, small, small, small],
            out_specs=out_spec,
            scratch_shapes=[pltpu.VMEM((coutp, 1), jnp.float32) for _ in range(8)]),
        compiler_params=pltpu.CompilerParams(
            # Both grid axes carry the global BatchNorm reduction -> must stay sequential.
            dimension_semantics=("arbitrary", "arbitrary"),
            vmem_limit_bytes=vmem_limit),
    )(xp, w1p, b1c, g1c, be1c, w2p, b2c, g2c, be2c)

    out = jnp.transpose(out2d.reshape(coutp, n_pad, lp), (1, 0, 2))
    if (n_pad, coutp, lp) == (n, cout, l):
        return out
    return out[:n, :cout, :l]


def init_params(key, in_ch, out_ch):
    k1, k2, k3, k4 = jax.random.split(key, 4)
    # PyTorch Conv1d layout: weight (out_ch, in_ch, K), bias (out_ch,)
    w1 = jax.random.normal(k1, (out_ch, in_ch, 3), jnp.float32) * 0.1
    b1 = jax.random.normal(k2, (out_ch,), jnp.float32) * 0.1
    w2 = jax.random.normal(k3, (out_ch, out_ch, 3), jnp.float32) * 0.1
    b2 = jax.random.normal(k4, (out_ch,), jnp.float32) * 0.1
    g1 = jnp.ones((out_ch,), jnp.float32)
    be1 = jnp.zeros((out_ch,), jnp.float32)
    g2 = jnp.ones((out_ch,), jnp.float32)
    be2 = jnp.zeros((out_ch,), jnp.float32)
    return dict(w1=w1, b1=b1, g1=g1, be1=be1, w2=w2, b2=b2, g2=g2, be2=be2)


def _reference(x, p):
    """Pure-JAX reference of the PyTorch forward (training-mode BatchNorm1d)."""
    def conv3(xin, w, b):
        y = jax.lax.conv_general_dilated(
            xin, w, window_strides=(1,), padding=((1, 1),),
            dimension_numbers=("NCH", "OIH", "NCH"))
        return y + b[None, :, None]

    def bn_relu(y, g, be):
        mean = jnp.mean(y, axis=(0, 2), keepdims=True)
        var = jnp.mean((y - mean) ** 2, axis=(0, 2), keepdims=True)
        yn = (y - mean) * jax.lax.rsqrt(var + EPS)
        return jnp.maximum(yn * g[None, :, None] + be[None, :, None], 0.0)

    h = bn_relu(conv3(x, p["w1"], p["b1"]), p["g1"], p["be1"])
    return bn_relu(conv3(h, p["w2"], p["b2"]), p["g2"], p["be2"])


if __name__ == "__main__":
    key = jax.random.PRNGKey(0)
    kx, kp, kx2, kp2 = jax.random.split(key, 4)

    # Small shape: single batch-tile, L << Lp (tail-padding path).
    N, IN_CH, OUT_CH, L = 2, 4, 8, 16
    x = jax.random.normal(kx, (N, IN_CH, L), jnp.float32)
    params = init_params(kp, IN_CH, OUT_CH)
    ref = _reference(x, params)

    out = jax.block_until_ready(double_conv(x, params))
    assert out.shape == (N, OUT_CH, L)
    assert jnp.allclose(out, ref, atol=2e-4, rtol=2e-4), "f32 kernel mismatch vs reference"

    # bf16 matmul path; BN math stays f32, loose tolerance.
    out_bf16 = jax.block_until_ready(double_conv(x, params, matmul_dtype=jnp.bfloat16))
    assert out_bf16.shape == (N, OUT_CH, L)
    assert jnp.allclose(out_bf16, ref, atol=1e-1, rtol=1e-1), "bf16 kernel mismatch vs reference"

    # Second shape: multiple batch-tiles + a padded sample in the last tile (masking paths).
    N2, IN2, OUT2, L2 = 5, 3, 6, 2000
    x2 = jax.random.normal(kx2, (N2, IN2, L2), jnp.float32)
    params2 = init_params(kp2, IN2, OUT2)
    ref2 = _reference(x2, params2)
    out2 = jax.block_until_ready(double_conv(x2, params2))
    assert out2.shape == (N2, OUT2, L2)
    assert jnp.allclose(out2, ref2, atol=1e-3, rtol=1e-3), "multi-tile kernel mismatch"

    print("KERNEL_OK")
</pallas_src>

<mosaic_0001>
module attributes {stable_mosaic.version = 11 : i64} {
  func.func @_double_conv_kernel(%arg0: i32, %arg1: i32, %arg2: memref<8x256xf32, #tpu.memory_space<vmem>>, %arg3: memref<3x8x8xf32, #tpu.memory_space<vmem>>, %arg4: memref<8x1xf32, #tpu.memory_space<vmem>>, %arg5: memref<8x1xf32, #tpu.memory_space<vmem>>, %arg6: memref<8x1xf32, #tpu.memory_space<vmem>>, %arg7: memref<3x8x8xf32, #tpu.memory_space<vmem>>, %arg8: memref<8x1xf32, #tpu.memory_space<vmem>>, %arg9: memref<8x1xf32, #tpu.memory_space<vmem>>, %arg10: memref<8x1xf32, #tpu.memory_space<vmem>>, %arg11: memref<8x256xf32, #tpu.memory_space<vmem>>, %arg12: memref<8x1xf32, #tpu.memory_space<vmem>>, %arg13: memref<8x1xf32, #tpu.memory_space<vmem>>, %arg14: memref<8x1xf32, #tpu.memory_space<vmem>>, %arg15: memref<8x1xf32, #tpu.memory_space<vmem>>, %arg16: memref<8x1xf32, #tpu.memory_space<vmem>>, %arg17: memref<8x1xf32, #tpu.memory_space<vmem>>, %arg18: memref<8x1xf32, #tpu.memory_space<vmem>>, %arg19: memref<8x1xf32, #tpu.memory_space<vmem>>) attributes {dimension_semantics = [#tpu.dimension_semantics<arbitrary>, #tpu.dimension_semantics<arbitrary>], iteration_bounds = array<i64: 3, 1>, scalar_prefetch = 0 : i64, scratch_operands = 8 : i64, tpu.core_type = #tpu.core_type<tc>, window_params = [{transform_indices = @transform_0, window_bounds = array<i64: 8, 256>}, {pipeline_mode = #tpu.pipeline_mode<synchronous>, transform_indices = @transform_1, window_bounds = array<i64: 3, 8, 8>}, {pipeline_mode = #tpu.pipeline_mode<synchronous>, transform_indices = @transform_2, window_bounds = array<i64: 8, 1>}, {pipeline_mode = #tpu.pipeline_mode<synchronous>, transform_indices = @transform_3, window_bounds = array<i64: 8, 1>}, {pipeline_mode = #tpu.pipeline_mode<synchronous>, transform_indices = @transform_4, window_bounds = array<i64: 8, 1>}, {pipeline_mode = #tpu.pipeline_mode<synchronous>, transform_indices = @transform_5, window_bounds = array<i64: 3, 8, 8>}, {pipeline_mode = #tpu.pipeline_mode<synchronous>, transform_indices = @transform_6, window_bounds = array<i64: 8, 1>}, {pipeline_mode = #tpu.pipeline_mode<synchronous>, transform_indices = @transform_7, window_bounds = array<i64: 8, 1>}, {pipeline_mode = #tpu.pipeline_mode<synchronous>, transform_indices = @transform_8, window_bounds = array<i64: 8, 1>}, {transform_indices = @transform_9, window_bounds = array<i64: 8, 256>}]} {
    %0 = tpu.iota {dimensions = array<i32: 1>} : vector<1x256xi32>
    %c127_i32 = arith.constant 127 : i32
    %1 = vector.broadcast %c127_i32 : i32 to vector<1x256xi32>
    %2 = arith.andi %0, %1 : vector<1x256xi32>
    %c2_i32 = arith.constant 2 : i32
    %3 = arith.muli %arg1, %c2_i32 : i32
    %c2_i32_0 = arith.constant 2 : i32
    %4 = arith.subi %c2_i32_0, %3 : i32
    %c2_i32_1 = arith.constant 2 : i32
    %5 = arith.minsi %4, %c2_i32_1 : i32
    %c128_i32 = arith.constant 128 : i32
    %6 = arith.muli %5, %c128_i32 : i32
    %c16_i32 = arith.constant 16 : i32
    %7 = vector.broadcast %c16_i32 : i32 to vector<1x256xi32>
    %8 = arith.cmpi slt, %2, %7 : vector<1x256xi32>
    %9 = vector.broadcast %6 : i32 to vector<1x256xi32>
    %10 = arith.cmpi slt, %0, %9 : vector<1x256xi32>
    %11 = arith.andi %8, %10 : vector<1x256xi1>
    %c0_i32 = arith.constant 0 : i32
    %12 = arith.cmpi eq, %arg0, %c0_i32 : i32
    %c0_i32_2 = arith.constant 0 : i32
    %13 = arith.cmpi eq, %arg1, %c0_i32_2 : i32
    %14 = arith.andi %12, %13 : i1
    %15 = arith.extui %14 : i1 to i32
    %c0_i32_3 = arith.constant 0 : i32
    %16 = arith.cmpi ne, %15, %c0_i32_3 : i32
    scf.if %16 {
      %cst = arith.constant 0.000000e+00 : f32
      %36 = vector.broadcast %cst : f32 to vector<8x1xf32>
      %c0 = arith.constant 0 : index
      %c0_15 = arith.constant 0 : index
      %37 = vector.load %arg12[%c0, %c0_15] : memref<8x1xf32, #tpu.memory_space<vmem>>, vector<8x1xf32>
      tpu.vector_store %arg12[%c0, %c0_15], %36 {strides = array<i32>} : memref<8x1xf32, #tpu.memory_space<vmem>>, vector<8x1xf32>,
      %cst_16 = arith.constant 0.000000e+00 : f32
      %38 = vector.broadcast %cst_16 : f32 to vector<8x1xf32>
      %c0_17 = arith.constant 0 : index
      %c0_18 = arith.constant 0 : index
      %39 = vector.load %arg13[%c0_17, %c0_18] : memref<8x1xf32, #tpu.memory_space<vmem>>, vector<8x1xf32>
      tpu.vector_store %arg13[%c0_17, %c0_18], %38 {strides = array<i32>} : memref<8x1xf32, #tpu.memory_space<vmem>>, vector<8x1xf32>,
      %cst_19 = arith.constant 0.000000e+00 : f32
      %40 = vector.broadcast %cst_19 : f32 to vector<8x1xf32>
      %c0_20 = arith.constant 0 : index
      %c0_21 = arith.constant 0 : index
      %41 = vector.load %arg14[%c0_20, %c0_21] : memref<8x1xf32, #tpu.memory_space<vmem>>, vector<8x1xf32>
      tpu.vector_store %arg14[%c0_20, %c0_21], %40 {strides = array<i32>} : memref<8x1xf32, #tpu.memory_space<vmem>>, vector<8x1xf32>,
      %cst_22 = arith.constant 0.000000e+00 : f32
      %42 = vector.broadcast %cst_22 : f32 to vector<8x1xf32>
      %c0_23 = arith.constant 0 : index
      %c0_24 = arith.constant 0 : index
      %43 = vector.load %arg15[%c0_23, %c0_24] : memref<8x1xf32, #tpu.memory_space<vmem>>, vector<8x1xf32>
      tpu.vector_store %arg15[%c0_23, %c0_24], %42 {strides = array<i32>} : memref<8x1xf32, #tpu.memory_space<vmem>>, vector<8x1xf32>,
    } else {
    }
    %c0_i32_4 = arith.constant 0 : i32
    %17 = arith.cmpi eq, %arg0, %c0_i32_4 : i32
    %18 = arith.extui %17 : i1 to i32
    %c0_i32_5 = arith.constant 0 : i32
    %19 = arith.cmpi ne, %18, %c0_i32_5 : i32
    scf.if %19 {
      %c0 = arith.constant 0 : index
      %c0_15 = arith.constant 0 : index
      %36 = vector.load %arg2[%c0, %c0_15] : memref<8x256xf32, #tpu.memory_space<vmem>>, vector<8x256xf32>
      %c0_16 = arith.constant 0 : index
      %c0_17 = arith.constant 0 : index
      %37 = vector.load %arg4[%c0_16, %c0_17] : memref<8x1xf32, #tpu.memory_space<vmem>>, vector<8x1xf32>
      %c1_i32_18 = arith.constant 1 : i32
      %38 = tpu.dynamic_rotate %36 by %c1_i32_18 dim 1 : vector<8x256xf32>, i32 -> vector<8x256xf32>
      %c255_i32 = arith.constant 255 : i32
      %39 = tpu.dynamic_rotate %36 by %c255_i32 dim 1 : vector<8x256xf32>, i32 -> vector<8x256xf32>
      %c0_19 = arith.constant 0 : index
      %c0_20 = arith.constant 0 : index
      %c0_21 = arith.constant 0 : index
      %40 = vector.load %arg3[%c0_19, %c0_20, %c0_21] : memref<3x8x8xf32, #tpu.memory_space<vmem>>, vector<1x8x8xf32>
      %41 = vector.shape_cast %40 : vector<1x8x8xf32> to vector<8x8xf32>
      %cst = arith.constant dense<0.000000e+00> : vector<8x256xf32>
      %42 = tpu.matmul %41, %38, %cst {dimension_numbers = #tpu.dot_dimension_numbers<[1], [0], [0], [1], [0, 0, 1, 1], [], []>} : vector<8x8xf32>, vector<8x256xf32>, vector<8x256xf32> -> vector<8x256xf32>
      %c1 = arith.constant 1 : index
      %c0_22 = arith.constant 0 : index
      %c0_23 = arith.constant 0 : index
      %43 = vector.load %arg3[%c1, %c0_22, %c0_23] : memref<3x8x8xf32, #tpu.memory_space<vmem>>, vector<1x8x8xf32>
      %44 = vector.shape_cast %43 : vector<1x8x8xf32> to vector<8x8xf32>
      %cst_24 = arith.constant dense<0.000000e+00> : vector<8x256xf32>
      %45 = tpu.matmul %44, %36, %cst_24 {dimension_numbers = #tpu.dot_dimension_numbers<[1], [0], [0], [1], [0, 0, 1, 1], [], []>} : vector<8x8xf32>, vector<8x256xf32>, vector<8x256xf32> -> vector<8x256xf32>
      %46 = arith.addf %42, %45 : vector<8x256xf32>
      %c2 = arith.constant 2 : index
      %c0_25 = arith.constant 0 : index
      %c0_26 = arith.constant 0 : index
      %47 = vector.load %arg3[%c2, %c0_25, %c0_26] : memref<3x8x8xf32, #tpu.memory_space<vmem>>, vector<1x8x8xf32>
      %48 = vector.shape_cast %47 : vector<1x8x8xf32> to vector<8x8xf32>
      %cst_27 = arith.constant dense<0.000000e+00> : vector<8x256xf32>
      %49 = tpu.matmul %48, %39, %cst_27 {dimension_numbers = #tpu.dot_dimension_numbers<[1], [0], [0], [1], [0, 0, 1, 1], [], []>} : vector<8x8xf32>, vector<8x256xf32>, vector<8x256xf32> -> vector<8x256xf32>
      %50 = arith.addf %46, %49 : vector<8x256xf32>
      %51 = vector.broadcast %37 : vector<8x1xf32> to vector<8x256xf32>
      %52 = arith.addf %50, %51 : vector<8x256xf32>
      %cst_28 = arith.constant 0.000000e+00 : f32
      %53 = vector.shape_cast %11 : vector<1x256xi1> to vector<1x256xi1>
      %54 = vector.broadcast %53 : vector<1x256xi1> to vector<8x256xi1>
      %55 = vector.broadcast %cst_28 : f32 to vector<8x256xf32>
      %56 = arith.select %54, %52, %55 : vector<8x256xi1>, vector<8x256xf32>
      %c0_29 = arith.constant 0 : index
      %c0_30 = arith.constant 0 : index
      %57 = vector.load %arg12[%c0_29, %c0_30] : memref<8x1xf32, #tpu.memory_space<vmem>>, vector<8x1xf32>
      %cst_31 = arith.constant dense<0.000000e+00> : vector<8xf32>
      %58 = vector.multi_reduction <add>, %56, %cst_31 [1] : vector<8x256xf32> to vector<8xf32>
      %59 = vector.shape_cast %58 : vector<8xf32> to vector<8x1xf32>
      %60 = arith.addf %57, %59 : vector<8x1xf32>
      %c0_32 = arith.constant 0 : index
      %c0_33 = arith.constant 0 : index
      %61 = vector.load %arg12[%c0_32, %c0_33] : memref<8x1xf32, #tpu.memory_space<vmem>>, vector<8x1xf32>
      tpu.vector_store %arg12[%c0_32, %c0_33], %60 {strides = array<i32>} : memref<8x1xf32, #tpu.memory_space<vmem>>, vector<8x1xf32>,
      %c0_34 = arith.constant 0 : index
      %c0_35 = arith.constant 0 : index
      %62 = vector.load %arg13[%c0_34, %c0_35] : memref<8x1xf32, #tpu.memory_space<vmem>>, vector<8x1xf32>
      %63 = arith.mulf %56, %56 : vector<8x256xf32>
      %cst_36 = arith.constant dense<0.000000e+00> : vector<8xf32>
      %64 = vector.multi_reduction <add>, %63, %cst_36 [1] : vector<8x256xf32> to vector<8xf32>
      %65 = vector.shape_cast %64 : vector<8xf32> to vector<8x1xf32>
      %66 = arith.addf %62, %65 : vector<8x1xf32>
      %c0_37 = arith.constant 0 : index
      %c0_38 = arith.constant 0 : index
      %67 = vector.load %arg13[%c0_37, %c0_38] : memref<8x1xf32, #tpu.memory_space<vmem>>, vector<8x1xf32>
      tpu.vector_store %arg13[%c0_37, %c0_38], %66 {strides = array<i32>} : memref<8x1xf32, #tpu.memory_space<vmem>>, vector<8x1xf32>,
    } else {
    }
    %c1_i32 = arith.constant 1 : i32
    %20 = arith.cmpi eq, %arg0, %c1_i32 : i32
    %c0_i32_6 = arith.constant 0 : i32
    %21 = arith.cmpi eq, %arg1, %c0_i32_6 : i32
    %22 = arith.andi %20, %21 : i1
    %23 = arith.extui %22 : i1 to i32
    %c0_i32_7 = arith.constant 0 : i32
    %24 = arith.cmpi ne, %23, %c0_i32_7 : i32
    scf.if %24 {
      %c0 = arith.constant 0 : index
      %c0_15 = arith.constant 0 : index
      %36 = vector.load %arg12[%c0, %c0_15] : memref<8x1xf32, #tpu.memory_space<vmem>>, vector<8x1xf32>
      %cst = arith.constant 3.125000e-02 : f32
      %37 = vector.broadcast %cst : f32 to vector<8x1xf32>
      %38 = arith.mulf %36, %37 : vector<8x1xf32>
      %c0_16 = arith.constant 0 : index
      %c0_17 = arith.constant 0 : index
      %39 = vector.load %arg13[%c0_16, %c0_17] : memref<8x1xf32, #tpu.memory_space<vmem>>, vector<8x1xf32>
      %cst_18 = arith.constant 3.125000e-02 : f32
      %40 = vector.broadcast %cst_18 : f32 to vector<8x1xf32>
      %41 = arith.mulf %39, %40 : vector<8x1xf32>
      %42 = arith.mulf %38, %38 : vector<8x1xf32>
      %43 = arith.subf %41, %42 : vector<8x1xf32>
      %c0_19 = arith.constant 0 : index
      %c0_20 = arith.constant 0 : index
      %44 = vector.load %arg5[%c0_19, %c0_20] : memref<8x1xf32, #tpu.memory_space<vmem>>, vector<8x1xf32>
      %cst_21 = arith.constant 9.99999974E-6 : f32
      %45 = vector.broadcast %cst_21 : f32 to vector<8x1xf32>
      %46 = arith.addf %43, %45 : vector<8x1xf32>
      %47 = math.rsqrt %46 : vector<8x1xf32>
      %48 = arith.mulf %44, %47 : vector<8x1xf32>
      %c0_22 = arith.constant 0 : index
      %c0_23 = arith.constant 0 : index
      %49 = vector.load %arg16[%c0_22, %c0_23] : memref<8x1xf32, #tpu.memory_space<vmem>>, vector<8x1xf32>
      tpu.vector_store %arg16[%c0_22, %c0_23], %48 {strides = array<i32>} : memref<8x1xf32, #tpu.memory_space<vmem>>, vector<8x1xf32>,
      %c0_24 = arith.constant 0 : index
      %c0_25 = arith.constant 0 : index
      %50 = vector.load %arg6[%c0_24, %c0_25] : memref<8x1xf32, #tpu.memory_space<vmem>>, vector<8x1xf32>
      %51 = arith.mulf %38, %48 : vector<8x1xf32>
      %52 = arith.subf %50, %51 : vector<8x1xf32>
      %c0_26 = arith.constant 0 : index
      %c0_27 = arith.constant 0 : index
      %53 = vector.load %arg17[%c0_26, %c0_27] : memref<8x1xf32, #tpu.memory_space<vmem>>, vector<8x1xf32>
      tpu.vector_store %arg17[%c0_26, %c0_27], %52 {strides = array<i32>} : memref<8x1xf32, #tpu.memory_space<vmem>>, vector<8x1xf32>,
    } else {
    }
    %c1_i32_8 = arith.constant 1 : i32
    %25 = arith.cmpi eq, %arg0, %c1_i32_8 : i32
    %26 = arith.extui %25 : i1 to i32
    %c0_i32_9 = arith.constant 0 : i32
    %27 = arith.cmpi ne, %26, %c0_i32_9 : i32
    scf.if %27 {
      %c0 = arith.constant 0 : index
      %c0_15 = arith.constant 0 : index
      %36 = vector.load %arg2[%c0, %c0_15] : memref<8x256xf32, #tpu.memory_space<vmem>>, vector<8x256xf32>
      %c0_16 = arith.constant 0 : index
      %c0_17 = arith.constant 0 : index
      %37 = vector.load %arg4[%c0_16, %c0_17] : memref<8x1xf32, #tpu.memory_space<vmem>>, vector<8x1xf32>
      %c1_i32_18 = arith.constant 1 : i32
      %38 = tpu.dynamic_rotate %36 by %c1_i32_18 dim 1 : vector<8x256xf32>, i32 -> vector<8x256xf32>
      %c255_i32 = arith.constant 255 : i32
      %39 = tpu.dynamic_rotate %36 by %c255_i32 dim 1 : vector<8x256xf32>, i32 -> vector<8x256xf32>
      %c0_19 = arith.constant 0 : index
      %c0_20 = arith.constant 0 : index
      %c0_21 = arith.constant 0 : index
      %40 = vector.load %arg3[%c0_19, %c0_20, %c0_21] : memref<3x8x8xf32, #tpu.memory_space<vmem>>, vector<1x8x8xf32>
      %41 = vector.shape_cast %40 : vector<1x8x8xf32> to vector<8x8xf32>
      %cst = arith.constant dense<0.000000e+00> : vector<8x256xf32>
      %42 = tpu.matmul %41, %38, %cst {dimension_numbers = #tpu.dot_dimension_numbers<[1], [0], [0], [1], [0, 0, 1, 1], [], []>} : vector<8x8xf32>, vector<8x256xf32>, vector<8x256xf32> -> vector<8x256xf32>
      %c1 = arith.constant 1 : index
      %c0_22 = arith.constant 0 : index
      %c0_23 = arith.constant 0 : index
      %43 = vector.load %arg3[%c1, %c0_22, %c0_23] : memref<3x8x8xf32, #tpu.memory_space<vmem>>, vector<1x8x8xf32>
      %44 = vector.shape_cast %43 : vector<1x8x8xf32> to vector<8x8xf32>
      %cst_24 = arith.constant dense<0.000000e+00> : vector<8x256xf32>
      %45 = tpu.matmul %44, %36, %cst_24 {dimension_numbers = #tpu.dot_dimension_numbers<[1], [0], [0], [1], [0, 0, 1, 1], [], []>} : vector<8x8xf32>, vector<8x256xf32>, vector<8x256xf32> -> vector<8x256xf32>
      %46 = arith.addf %42, %45 : vector<8x256xf32>
      %c2 = arith.constant 2 : index
      %c0_25 = arith.constant 0 : index
      %c0_26 = arith.constant 0 : index
      %47 = vector.load %arg3[%c2, %c0_25, %c0_26] : memref<3x8x8xf32, #tpu.memory_space<vmem>>, vector<1x8x8xf32>
      %48 = vector.shape_cast %47 : vector<1x8x8xf32> to vector<8x8xf32>
      %cst_27 = arith.constant dense<0.000000e+00> : vector<8x256xf32>
      %49 = tpu.matmul %48, %39, %cst_27 {dimension_numbers = #tpu.dot_dimension_numbers<[1], [0], [0], [1], [0, 0, 1, 1], [], []>} : vector<8x8xf32>, vector<8x256xf32>, vector<8x256xf32> -> vector<8x256xf32>
      %50 = arith.addf %46, %49 : vector<8x256xf32>
      %51 = vector.broadcast %37 : vector<8x1xf32> to vector<8x256xf32>
      %52 = arith.addf %50, %51 : vector<8x256xf32>
      %c0_28 = arith.constant 0 : index
      %c0_29 = arith.constant 0 : index
      %53 = vector.load %arg16[%c0_28, %c0_29] : memref<8x1xf32, #tpu.memory_space<vmem>>, vector<8x1xf32>
      %54 = vector.broadcast %53 : vector<8x1xf32> to vector<8x256xf32>
      %55 = arith.mulf %52, %54 : vector<8x256xf32>
      %c0_30 = arith.constant 0 : index
      %c0_31 = arith.constant 0 : index
      %56 = vector.load %arg17[%c0_30, %c0_31] : memref<8x1xf32, #tpu.memory_space<vmem>>, vector<8x1xf32>
      %57 = vector.broadcast %56 : vector<8x1xf32> to vector<8x256xf32>
      %58 = arith.addf %55, %57 : vector<8x256xf32>
      %cst_32 = arith.constant 0.000000e+00 : f32
      %59 = vector.broadcast %cst_32 : f32 to vector<8x256xf32>
      %60 = arith.maximumf %58, %59 : vector<8x256xf32>
      %cst_33 = arith.constant 0.000000e+00 : f32
      %61 = vector.shape_cast %11 : vector<1x256xi1> to vector<1x256xi1>
      %62 = vector.broadcast %61 : vector<1x256xi1> to vector<8x256xi1>
      %63 = vector.broadcast %cst_33 : f32 to vector<8x256xf32>
      %64 = arith.select %62, %60, %63 : vector<8x256xi1>, vector<8x256xf32>
      %c0_34 = arith.constant 0 : index
      %c0_35 = arith.constant 0 : index
      %65 = vector.load %arg8[%c0_34, %c0_35] : memref<8x1xf32, #tpu.memory_space<vmem>>, vector<8x1xf32>
      %c1_i32_36 = arith.constant 1 : i32
      %66 = tpu.dynamic_rotate %64 by %c1_i32_36 dim 1 : vector<8x256xf32>, i32 -> vector<8x256xf32>
      %c255_i32_37 = arith.constant 255 : i32
      %67 = tpu.dynamic_rotate %64 by %c255_i32_37 dim 1 : vector<8x256xf32>, i32 -> vector<8x256xf32>
      %c0_38 = arith.constant 0 : index
      %c0_39 = arith.constant 0 : index
      %c0_40 = arith.constant 0 : index
      %68 = vector.load %arg7[%c0_38, %c0_39, %c0_40] : memref<3x8x8xf32, #tpu.memory_space<vmem>>, vector<1x8x8xf32>
      %69 = vector.shape_cast %68 : vector<1x8x8xf32> to vector<8x8xf32>
      %cst_41 = arith.constant dense<0.000000e+00> : vector<8x256xf32>
      %70 = tpu.matmul %69, %66, %cst_41 {dimension_numbers = #tpu.dot_dimension_numbers<[1], [0], [0], [1], [0, 0, 1, 1], [], []>} : vector<8x8xf32>, vector<8x256xf32>, vector<8x256xf32> -> vector<8x256xf32>
      %c1_42 = arith.constant 1 : index
      %c0_43 = arith.constant 0 : index
      %c0_44 = arith.constant 0 : index
      %71 = vector.load %arg7[%c1_42, %c0_43, %c0_44] : memref<3x8x8xf32, #tpu.memory_space<vmem>>, vector<1x8x8xf32>
      %72 = vector.shape_cast %71 : vector<1x8x8xf32> to vector<8x8xf32>
      %cst_45 = arith.constant dense<0.000000e+00> : vector<8x256xf32>
      %73 = tpu.matmul %72, %64, %cst_45 {dimension_numbers = #tpu.dot_dimension_numbers<[1], [0], [0], [1], [0, 0, 1, 1], [], []>} : vector<8x8xf32>, vector<8x256xf32>, vector<8x256xf32> -> vector<8x256xf32>
      %74 = arith.addf %70, %73 : vector<8x256xf32>
      %c2_46 = arith.constant 2 : index
      %c0_47 = arith.constant 0 : index
      %c0_48 = arith.constant 0 : index
      %75 = vector.load %arg7[%c2_46, %c0_47, %c0_48] : memref<3x8x8xf32, #tpu.memory_space<vmem>>, vector<1x8x8xf32>
      %76 = vector.shape_cast %75 : vector<1x8x8xf32> to vector<8x8xf32>
      %cst_49 = arith.constant dense<0.000000e+00> : vector<8x256xf32>
      %77 = tpu.matmul %76, %67, %cst_49 {dimension_numbers = #tpu.dot_dimension_numbers<[1], [0], [0], [1], [0, 0, 1, 1], [], []>} : vector<8x8xf32>, vector<8x256xf32>, vector<8x256xf32> -> vector<8x256xf32>
      %78 = arith.addf %74, %77 : vector<8x256xf32>
      %79 = vector.broadcast %65 : vector<8x1xf32> to vector<8x256xf32>
      %80 = arith.addf %78, %79 : vector<8x256xf32>
      %cst_50 = arith.constant 0.000000e+00 : f32
      %81 = vector.shape_cast %11 : vector<1x256xi1> to vector<1x256xi1>
      %82 = vector.broadcast %81 : vector<1x256xi1> to vector<8x256xi1>
      %83 = vector.broadcast %cst_50 : f32 to vector<8x256xf32>
      %84 = arith.select %82, %80, %83 : vector<8x256xi1>, vector<8x256xf32>
      %c0_51 = arith.constant 0 : index
      %c0_52 = arith.constant 0 : index
      %85 = vector.load %arg14[%c0_51, %c0_52] : memref<8x1xf32, #tpu.memory_space<vmem>>, vector<8x1xf32>
      %cst_53 = arith.constant dense<0.000000e+00> : vector<8xf32>
      %86 = vector.multi_reduction <add>, %84, %cst_53 [1] : vector<8x256xf32> to vector<8xf32>
      %87 = vector.shape_cast %86 : vector<8xf32> to vector<8x1xf32>
      %88 = arith.addf %85, %87 : vector<8x1xf32>
      %c0_54 = arith.constant 0 : index
      %c0_55 = arith.constant 0 : index
      %89 = vector.load %arg14[%c0_54, %c0_55] : memref<8x1xf32, #tpu.memory_space<vmem>>, vector<8x1xf32>
      tpu.vector_store %arg14[%c0_54, %c0_55], %88 {strides = array<i32>} : memref<8x1xf32, #tpu.memory_space<vmem>>, vector<8x1xf32>,
      %c0_56 = arith.constant 0 : index
      %c0_57 = arith.constant 0 : index
      %90 = vector.load %arg15[%c0_56, %c0_57] : memref<8x1xf32, #tpu.memory_space<vmem>>, vector<8x1xf32>
      %91 = arith.mulf %84, %84 : vector<8x256xf32>
      %cst_58 = arith.constant dense<0.000000e+00> : vector<8xf32>
      %92 = vector.multi_reduction <add>, %91, %cst_58 [1] : vector<8x256xf32> to vector<8xf32>
      %93 = vector.shape_cast %92 : vector<8xf32> to vector<8x1xf32>
      %94 = arith.addf %90, %93 : vector<8x1xf32>
      %c0_59 = arith.constant 0 : index
      %c0_60 = arith.constant 0 : index
      %95 = vector.load %arg15[%c0_59, %c0_60] : memref<8x1xf32, #tpu.memory_space<vmem>>, vector<8x1xf32>
      tpu.vector_store %arg15[%c0_59, %c0_60], %94 {strides = array<i32>} : memref<8x1xf32, #tpu.memory_space<vmem>>, vector<8x1xf32>,
    } else {
    }
    %c2_i32_10 = arith.constant 2 : i32
    %28 = arith.cmpi eq, %arg0, %c2_i32_10 : i32
    %c0_i32_11 = arith.constant 0 : i32
    %29 = arith.cmpi eq, %arg1, %c0_i32_11 : i32
    %30 = arith.andi %28, %29 : i1
    %31 = arith.extui %30 : i1 to i32
    %c0_i32_12 = arith.constant 0 : i32
    %32 = arith.cmpi ne, %31, %c0_i32_12 : i32
    scf.if %32 {
      %c0 = arith.constant 0 : index
      %c0_15 = arith.constant 0 : index
      %36 = vector.load %arg14[%c0, %c0_15] : memref<8x1xf32, #tpu.memory_space<vmem>>, vector<8x1xf32>
      %cst = arith.constant 3.125000e-02 : f32
      %37 = vector.broadcast %cst : f32 to vector<8x1xf32>
      %38 = arith.mulf %36, %37 : vector<8x1xf32>
      %c0_16 = arith.constant 0 : index
      %c0_17 = arith.constant 0 : index
      %39 = vector.load %arg15[%c0_16, %c0_17] : memref<8x1xf32, #tpu.memory_space<vmem>>, vector<8x1xf32>
      %cst_18 = arith.constant 3.125000e-02 : f32
      %40 = vector.broadcast %cst_18 : f32 to vector<8x1xf32>
      %41 = arith.mulf %39, %40 : vector<8x1xf32>
      %42 = arith.mulf %38, %38 : vector<8x1xf32>
      %43 = arith.subf %41, %42 : vector<8x1xf32>
      %c0_19 = arith.constant 0 : index
      %c0_20 = arith.constant 0 : index
      %44 = vector.load %arg9[%c0_19, %c0_20] : memref<8x1xf32, #tpu.memory_space<vmem>>, vector<8x1xf32>
      %cst_21 = arith.constant 9.99999974E-6 : f32
      %45 = vector.broadcast %cst_21 : f32 to vector<8x1xf32>
      %46 = arith.addf %43, %45 : vector<8x1xf32>
      %47 = math.rsqrt %46 : vector<8x1xf32>
      %48 = arith.mulf %44, %47 : vector<8x1xf32>
      %c0_22 = arith.constant 0 : index
      %c0_23 = arith.constant 0 : index
      %49 = vector.load %arg18[%c0_22, %c0_23] : memref<8x1xf32, #tpu.memory_space<vmem>>, vector<8x1xf32>
      tpu.vector_store %arg18[%c0_22, %c0_23], %48 {strides = array<i32>} : memref<8x1xf32, #tpu.memory_space<vmem>>, vector<8x1xf32>,
      %c0_24 = arith.constant 0 : index
      %c0_25 = arith.constant 0 : index
      %50 = vector.load %arg10[%c0_24, %c0_25] : memref<8x1xf32, #tpu.memory_space<vmem>>, vector<8x1xf32>
      %51 = arith.mulf %38, %48 : vector<8x1xf32>
      %52 = arith.subf %50, %51 : vector<8x1xf32>
      %c0_26 = arith.constant 0 : index
      %c0_27 = arith.constant 0 : index
      %53 = vector.load %arg19[%c0_26, %c0_27] : memref<8x1xf32, #tpu.memory_space<vmem>>, vector<8x1xf32>
      tpu.vector_store %arg19[%c0_26, %c0_27], %52 {strides = array<i32>} : memref<8x1xf32, #tpu.memory_space<vmem>>, vector<8x1xf32>,
    } else {
    }
    %c2_i32_13 = arith.constant 2 : i32
    %33 = arith.cmpi eq, %arg0, %c2_i32_13 : i32
    %34 = arith.extui %33 : i1 to i32
    %c0_i32_14 = arith.constant 0 : i32
    %35 = arith.cmpi ne, %34, %c0_i32_14 : i32
    scf.if %35 {
      %c0 = arith.constant 0 : index
      %c0_15 = arith.constant 0 : index
      %36 = vector.load %arg2[%c0, %c0_15] : memref<8x256xf32, #tpu.memory_space<vmem>>, vector<8x256xf32>
      %c0_16 = arith.constant 0 : index
      %c0_17 = arith.constant 0 : index
      %37 = vector.load %arg4[%c0_16, %c0_17] : memref<8x1xf32, #tpu.memory_space<vmem>>, vector<8x1xf32>
      %c1_i32_18 = arith.constant 1 : i32
      %38 = tpu.dynamic_rotate %36 by %c1_i32_18 dim 1 : vector<8x256xf32>, i32 -> vector<8x256xf32>
      %c255_i32 = arith.constant 255 : i32
      %39 = tpu.dynamic_rotate %36 by %c255_i32 dim 1 : vector<8x256xf32>, i32 -> vector<8x256xf32>
      %c0_19 = arith.constant 0 : index
      %c0_20 = arith.constant 0 : index
      %c0_21 = arith.constant 0 : index
      %40 = vector.load %arg3[%c0_19, %c0_20, %c0_21] : memref<3x8x8xf32, #tpu.memory_space<vmem>>, vector<1x8x8xf32>
      %41 = vector.shape_cast %40 : vector<1x8x8xf32> to vector<8x8xf32>
      %cst = arith.constant dense<0.000000e+00> : vector<8x256xf32>
      %42 = tpu.matmul %41, %38, %cst {dimension_numbers = #tpu.dot_dimension_numbers<[1], [0], [0], [1], [0, 0, 1, 1], [], []>} : vector<8x8xf32>, vector<8x256xf32>, vector<8x256xf32> -> vector<8x256xf32>
      %c1 = arith.constant 1 : index
      %c0_22 = arith.constant 0 : index
      %c0_23 = arith.constant 0 : index
      %43 = vector.load %arg3[%c1, %c0_22, %c0_23] : memref<3x8x8xf32, #tpu.memory_space<vmem>>, vector<1x8x8xf32>
      %44 = vector.shape_cast %43 : vector<1x8x8xf32> to vector<8x8xf32>
      %cst_24 = arith.constant dense<0.000000e+00> : vector<8x256xf32>
      %45 = tpu.matmul %44, %36, %cst_24 {dimension_numbers = #tpu.dot_dimension_numbers<[1], [0], [0], [1], [0, 0, 1, 1], [], []>} : vector<8x8xf32>, vector<8x256xf32>, vector<8x256xf32> -> vector<8x256xf32>
      %46 = arith.addf %42, %45 : vector<8x256xf32>
      %c2 = arith.constant 2 : index
      %c0_25 = arith.constant 0 : index
      %c0_26 = arith.constant 0 : index
      %47 = vector.load %arg3[%c2, %c0_25, %c0_26] : memref<3x8x8xf32, #tpu.memory_space<vmem>>, vector<1x8x8xf32>
      %48 = vector.shape_cast %47 : vector<1x8x8xf32> to vector<8x8xf32>
      %cst_27 = arith.constant dense<0.000000e+00> : vector<8x256xf32>
      %49 = tpu.matmul %48, %39, %cst_27 {dimension_numbers = #tpu.dot_dimension_numbers<[1], [0], [0], [1], [0, 0, 1, 1], [], []>} : vector<8x8xf32>, vector<8x256xf32>, vector<8x256xf32> -> vector<8x256xf32>
      %50 = arith.addf %46, %49 : vector<8x256xf32>
      %51 = vector.broadcast %37 : vector<8x1xf32> to vector<8x256xf32>
      %52 = arith.addf %50, %51 : vector<8x256xf32>
      %c0_28 = arith.constant 0 : index
      %c0_29 = arith.constant 0 : index
      %53 = vector.load %arg16[%c0_28, %c0_29] : memref<8x1xf32, #tpu.memory_space<vmem>>, vector<8x1xf32>
      %54 = vector.broadcast %53 : vector<8x1xf32> to vector<8x256xf32>
      %55 = arith.mulf %52, %54 : vector<8x256xf32>
      %c0_30 = arith.constant 0 : index
      %c0_31 = arith.constant 0 : index
      %56 = vector.load %arg17[%c0_30, %c0_31] : memref<8x1xf32, #tpu.memory_space<vmem>>, vector<8x1xf32>
      %57 = vector.broadcast %56 : vector<8x1xf32> to vector<8x256xf32>
      %58 = arith.addf %55, %57 : vector<8x256xf32>
      %cst_32 = arith.constant 0.000000e+00 : f32
      %59 = vector.broadcast %cst_32 : f32 to vector<8x256xf32>
      %60 = arith.maximumf %58, %59 : vector<8x256xf32>
      %cst_33 = arith.constant 0.000000e+00 : f32
      %61 = vector.shape_cast %11 : vector<1x256xi1> to vector<1x256xi1>
      %62 = vector.broadcast %61 : vector<1x256xi1> to vector<8x256xi1>
      %63 = vector.broadcast %cst_33 : f32 to vector<8x256xf32>
      %64 = arith.select %62, %60, %63 : vector<8x256xi1>, vector<8x256xf32>
      %c0_34 = arith.constant 0 : index
      %c0_35 = arith.constant 0 : index
      %65 = vector.load %arg8[%c0_34, %c0_35] : memref<8x1xf32, #tpu.memory_space<vmem>>, vector<8x1xf32>
      %c1_i32_36 = arith.constant 1 : i32
      %66 = tpu.dynamic_rotate %64 by %c1_i32_36 dim 1 : vector<8x256xf32>, i32 -> vector<8x256xf32>
      %c255_i32_37 = arith.constant 255 : i32
      %67 = tpu.dynamic_rotate %64 by %c255_i32_37 dim 1 : vector<8x256xf32>, i32 -> vector<8x256xf32>
      %c0_38 = arith.constant 0 : index
      %c0_39 = arith.constant 0 : index
      %c0_40 = arith.constant 0 : index
      %68 = vector.load %arg7[%c0_38, %c0_39, %c0_40] : memref<3x8x8xf32, #tpu.memory_space<vmem>>, vector<1x8x8xf32>
      %69 = vector.shape_cast %68 : vector<1x8x8xf32> to vector<8x8xf32>
      %cst_41 = arith.constant dense<0.000000e+00> : vector<8x256xf32>
      %70 = tpu.matmul %69, %66, %cst_41 {dimension_numbers = #tpu.dot_dimension_numbers<[1], [0], [0], [1], [0, 0, 1, 1], [], []>} : vector<8x8xf32>, vector<8x256xf32>, vector<8x256xf32> -> vector<8x256xf32>
      %c1_42 = arith.constant 1 : index
      %c0_43 = arith.constant 0 : index
      %c0_44 = arith.constant 0 : index
      %71 = vector.load %arg7[%c1_42, %c0_43, %c0_44] : memref<3x8x8xf32, #tpu.memory_space<vmem>>, vector<1x8x8xf32>
      %72 = vector.shape_cast %71 : vector<1x8x8xf32> to vector<8x8xf32>
      %cst_45 = arith.constant dense<0.000000e+00> : vector<8x256xf32>
      %73 = tpu.matmul %72, %64, %cst_45 {dimension_numbers = #tpu.dot_dimension_numbers<[1], [0], [0], [1], [0, 0, 1, 1], [], []>} : vector<8x8xf32>, vector<8x256xf32>, vector<8x256xf32> -> vector<8x256xf32>
      %74 = arith.addf %70, %73 : vector<8x256xf32>
      %c2_46 = arith.constant 2 : index
      %c0_47 = arith.constant 0 : index
      %c0_48 = arith.constant 0 : index
      %75 = vector.load %arg7[%c2_46, %c0_47, %c0_48] : memref<3x8x8xf32, #tpu.memory_space<vmem>>, vector<1x8x8xf32>
      %76 = vector.shape_cast %75 : vector<1x8x8xf32> to vector<8x8xf32>
      %cst_49 = arith.constant dense<0.000000e+00> : vector<8x256xf32>
      %77 = tpu.matmul %76, %67, %cst_49 {dimension_numbers = #tpu.dot_dimension_numbers<[1], [0], [0], [1], [0, 0, 1, 1], [], []>} : vector<8x8xf32>, vector<8x256xf32>, vector<8x256xf32> -> vector<8x256xf32>
      %78 = arith.addf %74, %77 : vector<8x256xf32>
      %79 = vector.broadcast %65 : vector<8x1xf32> to vector<8x256xf32>
      %80 = arith.addf %78, %79 : vector<8x256xf32>
      %c0_50 = arith.constant 0 : index
      %c0_51 = arith.constant 0 : index
      %81 = vector.load %arg18[%c0_50, %c0_51] : memref<8x1xf32, #tpu.memory_space<vmem>>, vector<8x1xf32>
      %82 = vector.broadcast %81 : vector<8x1xf32> to vector<8x256xf32>
      %83 = arith.mulf %80, %82 : vector<8x256xf32>
      %c0_52 = arith.constant 0 : index
      %c0_53 = arith.constant 0 : index
      %84 = vector.load %arg19[%c0_52, %c0_53] : memref<8x1xf32, #tpu.memory_space<vmem>>, vector<8x1xf32>
      %85 = vector.broadcast %84 : vector<8x1xf32> to vector<8x256xf32>
      %86 = arith.addf %83, %85 : vector<8x256xf32>
      %cst_54 = arith.constant 0.000000e+00 : f32
      %87 = vector.broadcast %cst_54 : f32 to vector<8x256xf32>
      %88 = arith.maximumf %86, %87 : vector<8x256xf32>
      %c0_55 = arith.constant 0 : index
      %c0_56 = arith.constant 0 : index
      %89 = vector.load %arg11[%c0_55, %c0_56] : memref<8x256xf32, #tpu.memory_space<vmem>>, vector<8x256xf32>
      tpu.vector_store %arg11[%c0_55, %c0_56], %88 {strides = array<i32>} : memref<8x256xf32, #tpu.memory_space<vmem>>, vector<8x256xf32>,
    } else {
    }
    return
  }
  func.func @transform_0(%arg0: i32, %arg1: i32) -> (i32, i32) {
    %c0_i32 = arith.constant 0 : i32
    %c0_i32_0 = arith.constant 0 : i32
    return %c0_i32, %arg1 : i32, i32
  }
  func.func @transform_1(%arg0: i32, %arg1: i32) -> (i32, i32, i32) {
    %c0_i32 = arith.constant 0 : i32
    %c0_i32_0 = arith.constant 0 : i32
    %c0_i32_1 = arith.constant 0 : i32
    %c0_i32_2 = arith.constant 0 : i32
    return %c0_i32, %c0_i32_0, %c0_i32_1 : i32, i32, i32
  }
  func.func @transform_2(%arg0: i32, %arg1: i32) -> (i32, i32) {
    %c0_i32 = arith.constant 0 : i32
    %c0_i32_0 = arith.constant 0 : i32
    %c0_i32_1 = arith.constant 0 : i32
    return %c0_i32, %c0_i32_0 : i32, i32
  }
  func.func @transform_3(%arg0: i32, %arg1: i32) -> (i32, i32) {
    %c0_i32 = arith.constant 0 : i32
    %c0_i32_0 = arith.constant 0 : i32
    %c0_i32_1 = arith.constant 0 : i32
    return %c0_i32, %c0_i32_0 : i32, i32
  }
  func.func @transform_4(%arg0: i32, %arg1: i32) -> (i32, i32) {
    %c0_i32 = arith.constant 0 : i32
    %c0_i32_0 = arith.constant 0 : i32
    %c0_i32_1 = arith.constant 0 : i32
    return %c0_i32, %c0_i32_0 : i32, i32
  }
  func.func @transform_5(%arg0: i32, %arg1: i32) -> (i32, i32, i32) {
    %c0_i32 = arith.constant 0 : i32
    %c0_i32_0 = arith.constant 0 : i32
    %c0_i32_1 = arith.constant 0 : i32
    %c0_i32_2 = arith.constant 0 : i32
    return %c0_i32, %c0_i32_0, %c0_i32_1 : i32, i32, i32
  }
  func.func @transform_6(%arg0: i32, %arg1: i32) -> (i32, i32) {
    %c0_i32 = arith.constant 0 : i32
    %c0_i32_0 = arith.constant 0 : i32
    %c0_i32_1 = arith.constant 0 : i32
    return %c0_i32, %c0_i32_0 : i32, i32
  }
  func.func @transform_7(%arg0: i32, %arg1: i32) -> (i32, i32) {
    %c0_i32 = arith.constant 0 : i32
    %c0_i32_0 = arith.constant 0 : i32
    %c0_i32_1 = arith.constant 0 : i32
    return %c0_i32, %c0_i32_0 : i32, i32
  }
  func.func @transform_8(%arg0: i32, %arg1: i32) -> (i32, i32) {
    %c0_i32 = arith.constant 0 : i32
    %c0_i32_0 = arith.constant 0 : i32
    %c0_i32_1 = arith.constant 0 : i32
    return %c0_i32, %c0_i32_0 : i32, i32
  }
  func.func @transform_9(%arg0: i32, %arg1: i32) -> (i32, i32) {
    %c2_i32 = arith.constant 2 : i32
    %0 = arith.cmpi eq, %arg0, %c2_i32 : i32
    %c0_i32 = arith.constant 0 : i32
    %1 = arith.select %0, %arg1, %c0_i32 : i32
    %c0_i32_0 = arith.constant 0 : i32
    %c0_i32_1 = arith.constant 0 : i32
    return %c0_i32_0, %1 : i32, i32
  }
}

</mosaic_0001>

<bundles_post_ra>
// kernel: tpu_custom_call.1
= control target key start
LH: loop header
LB: loop body
LE: loop exit
PB: predicated region body
PF: predicated region fallthrough
CT: control target
= control target key end

     0   :  { %14 = vsyncpa [#allocation11], 0  ;;  %s2099_s0 = inlined_call_operand.vmem [shape: f32[8,256], index: 0, kind: input, shape index: {}]   ;;  %s2100_s1 = inlined_call_operand.hbm [shape: f32[3,8,8], index: 1, kind: input, shape index: {}]   ;;  %s2101_s2 = inlined_call_operand.vmem [shape: f32[8,1], index: 2, kind: input, shape index: {}]   ;;  %s2102_s3 = inlined_call_operand.vmem [shape: f32[8,1], index: 3, kind: input, shape index: {}]   ;;  %s2103_s4 = inlined_call_operand.vmem [shape: f32[8,1], index: 4, kind: input, shape index: {}]   ;;  %s2104_s5 = inlined_call_operand.hbm [shape: f32[3,8,8], index: 5, kind: input, shape index: {}]   ;;  %s2105_s6 = inlined_call_operand.vmem [shape: f32[8,1], index: 6, kind: input, shape index: {}]   ;;  %s2106_s7 = inlined_call_operand.vmem [shape: f32[8,1], index: 7, kind: input, shape index: {}]   ;;  %s2107_s8 = inlined_call_operand.vmem [shape: f32[8,1], index: 8, kind: input, shape index: {}]   ;;  %s2108_s9 = inlined_call_operand.hbm [shape: f32[8,256], index: 9, kind: output, shape index: {}]  }
   0x1   :  { %15 = vsyncpa [#allocation14], 0 }
   0x2   :  { %16 = vsyncpa [#allocation12], 0 }
   0x3   :  { %18 = vsyncpa [#allocation12 + $0x1], 0  ;;  %s1871_s30 = smov 0   ;;  %s1873_s10 = smov 0  }
   0x4   :  { %s1875_s11 = smov 0  }
   0x5 LB: > { %s1495_s12 = sadd.s32 4294967295, %s1804_s11   ;;  %s1496_s13 = sadd.s32 4294967294, %s1804_s11   ;;  %s1804_s11 = sphi %s1875_s11, %s24_s11   ;;  %s1800_s10 = sphi %s1873_s10, %s2114_s10   ;;  %s1796_s30 = sphi %s1871_s30, %s2113_s30  }
   0x6   : > { %s36_s14 = sadd.s32 1, %s1800_s10  ;;  %p1497_p0 = scmp.ge.s32.totalorder %s1804_s11, 1 }
   0x7   : > { %p38_p1 = scmp.ge.s32.totalorder %s36_s14, 3  ;;  %p265_p2 = scmp.lt.s32.totalorder %s1804_s11, 4 }
   0x8   : > { %p1893_p3 = scmp.eq.s32.totalorder %s1495_s12, 0  ;;  %s285_s19 = sshll.u32 %s2100_s1, 4  ;;  %s286_s19 = int_to_ptr.hbm [resolvable:$true] %s285_s19 }
   0x9   : > { %s2116_s14 = smov (%p38_p1, %s36_s14), 0  ;;  %p1899_p4 = pnand %p1497_p0, %p265_p2 }
   0xa   : > { %s1806_s20 = smov [#allocation10]   ;;  %s308_s24 = sshll.u32 %s2104_s5, 4  ;;  %s309_s24 = int_to_ptr.hbm [resolvable:$true] %s308_s24 }
   0xb   : > { %p1563_p5 = pneg %p1899_p4  ;;  %s287_s21 = sshll.u32 %s1806_s20, 4  ;;  %s288_s21 = int_to_ptr.vmem [resolvable:$true] %s287_s21 }
   0xc   : > { %s1807_s25 = smov 128   ;;  %s1808_s26 = smov 8  }
   0xd   : > { %p1564_p6 = pnand %p1893_p3, %p1563_p5  ;;  %s1809_s27 = smov [#allocation13]  }
   0xe   : > { %s310_s28 = sshll.u32 %s1809_s27, 4  ;;  %335 = sbr.rel (%p1899_p4) target bundleno = 1688 (0x698), region = 56  ;;  %s311_s28 = int_to_ptr.vmem [resolvable:$true] %s310_s28 }
   0xf   : > { %1566 = dma.hbm_to_vmem [thread:$0]  (!%p1564_p6), %s286_s19, 384, %s288_s21, [#allocation11], %s1807_s25, %s1807_s25, %s1808_s26  }
  0x10   : > { %1569 = dma.hbm_to_vmem [thread:$0]  (!%p1564_p6), %s309_s24, 384, %s311_s28, [#allocation14], %s1807_s25, %s1807_s25, %s1808_s26  }
  0x13   : > { %1783 = dma.done.wait (%p1893_p3), [#allocation11], 384  }
  0x14   : > { %1785 = vsyncadd (%p1893_p3), [#allocation11], 4294966912 }
  0x15   : > { %1787 = dma.done.wait (%p1893_p3), [#allocation14], 384  }
  0x16   : > { %1789 = vsyncadd (%p1893_p3), [#allocation14], 4294966912  ;;  %v386_v0 = vlaneseq  ;;  %p403_p7 = scmp.eq.s32.totalorder %s1796_s30, 0 }
  0x17   : > { %vm409_vm2 = vcmask (%p403_p7), 7168   ;;  %v1810_v5 = vmov (%p403_p7), 0.0  }
  0x18   : > { %v1924_v1 = vand.u32 127, %v386_v0  ;;  %410 = vst.msk [vmem:[#allocation2] sm:$0xff] (%p403_p7), %vm409_vm2, %v1810_v5 }
  0x19   : > { %411 = vst.msk [vmem:[#allocation3] sm:$0xff] (%p403_p7), %vm409_vm2, %v1810_v5 }
  0x1a   : > { %v388_v2 = vadd.s32 128, %v1924_v1  ;;  %vm396_vm0 = vcmp.lt.s32.totalorder %v1924_v1, 16  ;;  %408 = sbr.rel (!%p403_p7) target bundleno = 31 (0x1f), region = 68  ;;  %412 = vst.msk [vmem:[#allocation4] sm:$0xff] (%p403_p7), %vm409_vm2, %v1810_v5 }
  0x1b   : > { %413 = vst.msk [vmem:[#allocation5] sm:$0xff] (%p403_p7), %vm409_vm2, %v1810_v5 }
  0x1c   : > { %v390_v3 = vand.u32 127, %v388_v2 }
  0x1e   : > { %vm1928_vm1 = vcmp.lt.s32.totalorder %v390_v3, 16 }
  0x1f PF: > { %p1505_p8 = scmp.ne.s32.totalorder %s1796_s30, 0 }
  0x20   : > { %s1811_s18 = smov (!%p1505_p8), 1   ;;  %s1812_s19 = smov (!%p1505_p8), 127  }
  0x21   : > { %416 = sbr.rel (%p1505_p8) target bundleno = 422 (0x1a6), region = 72 }
  0x26   : > { %v417_v6 = vld [vmem:[%s2099_s0] sm:$0xff]  ;;  %v418_v7 = vld [vmem:[%s2099_s0 + $0x8] sm:$0xff]  ;;  %vm437_vm3 = vcmask 64512   ;;  %v1813_v11 = vmov 0   ;;  %vm424_vm4 = vcmp.lt.s32.totalorder %v1924_v1, 1  ;;  %vm431_vm5 = vcmp.lt.s32.totalorder %v1924_v1, 127 }
  0x27   : > { %v1620_v8 = vpack.i.bf16 %v418_v7, %v417_v6  ;;  %456 = vmatpush.msra.mxu0 %v417_v6  ;;  %476 = vmatpush.msra.mxu1 %v418_v7  ;;  %v436_v9 = vld [vmem:[#allocation10 + $0x8] sm:$0xff]  ;;  %v419_v10 = vld [vmem:[%s2101_s2] sm:$0xff]  ;;  %v525_v21 = vld [vmem:[#allocation10 + $0x10] sm:$0xff]  ;;  %vm589_vm6 = vcmask 7168  }
  0x28   : > { %1506 = vmatmul.msk.f32.vlgmr.msra.gmra.mxu0 %vm437_vm3, %v436_v9  ;;  %1507 = vmatmul.msk.f32.vlgmr.msra.gmra.mxu1 %vm437_vm3, %v436_v9  ;;  %v434_v15 = vld [vmem:[#allocation10] sm:$0xff]  ;;  %v591_v45 = vld [vmem:[#allocation3] sm:$0xff] }
  0x29   : > { %1621 = vrot.lane.b32.xlu0 %v1620_v8, %s1811_s18  ;;  %1630 = vset.pattern.permute.xlu1 %v1813_v11  ;;  %v584_v43 = vld [vmem:[#allocation2] sm:$0xff] }
  0x2a   : > { %1631 = vset.pattern.permute.xlu0 %v1813_v11  ;;  %573 = vperm.xlu1 %1630, %v419_v10  }
  0x31   : > { %1626 = vrot.lane.b32.xlu0 %v1620_v8, %s1812_s19 }
  0x9b   : > { %v1622_v12 = vpop.permute.xlu0 %1621 }
  0x9c   : > { %v1624_v13 = vunpack.i.h.bf16 %v1622_v12  ;;  %v1623_v14 = vunpack.i.l.bf16 %v1622_v12  ;;  %v574_v30 = vpop.permute.xlu1 %573 }
  0x9e   : > { %v426_v16 = vsel %vm424_vm4, %v1624_v13, %v1623_v14  ;;  %v425_v17 = vsel %vm424_vm4, %v1623_v14, %v1624_v13 }
  0x9f   : > { %499 = vmatpush.msra.mxu2 %v426_v16  ;;  %519 = vmatpush.msra.mxu3 %v425_v17 }
  0xa0   : > { %1508 = vmatmul.msk.f32.vlgmr.msra.gmra.mxu2 %vm437_vm3, %v434_v15  ;;  %1509 = vmatmul.msk.f32.vlgmr.msra.gmra.mxu3 %vm437_vm3, %v434_v15 }
  0xa3   : > { %v1627_v18 = vpop.permute.xlu0 %1626 }
  0xa4   : > { %v1629_v19 = vunpack.i.h.bf16 %v1627_v18  ;;  %v1628_v20 = vunpack.i.l.bf16 %v1627_v18 }
  0xa5   : > { %v458_v24 = vpop.f32.mrf.mxu0  ;;  %v478_v25 = vpop.f32.mrf.mxu1 }
  0xa6   : > { %v432_v22 = vsel %vm431_vm5, %v1628_v20, %v1629_v19  ;;  %v433_v23 = vsel %vm431_vm5, %v1629_v19, %v1628_v20 }
  0xa7   : > { %544 = vmatpush.msrb.mxu0 %v432_v22  ;;  %564 = vmatpush.msrb.mxu1 %v433_v23 }
  0xa8   : > { %1510 = vmatmul.msk.f32.vlgmr.msrb.gmra.mxu0 %vm437_vm3, %v525_v21  ;;  %1511 = vmatmul.msk.f32.vlgmr.msrb.gmra.mxu1 %vm437_vm3, %v525_v21 }
 0x123   : > { %v501_v26 = vpop.f32.mrf.mxu2  ;;  %v521_v27 = vpop.f32.mrf.mxu3 }
 0x124   : > { %v502_v28 = vadd.f32 %v501_v26, %v458_v24  ;;  %v522_v29 = vadd.f32 %v521_v27, %v478_v25 }
 0x125   : > { %v546_v31 = vpop.f32.mrf.mxu0  ;;  %v566_v32 = vpop.f32.mrf.mxu1 }
 0x126   : > { %v569_v33 = vadd.f32 %v546_v31, %v502_v28  ;;  %v570_v34 = vadd.f32 %v566_v32, %v522_v29 }
 0x128   : > { %v576_v35 = vadd.f32 %v574_v30, %v569_v33  ;;  %v577_v36 = vadd.f32 %v574_v30, %v570_v34 }
 0x12a   : > { %v582_v37 = vsel %vm396_vm0, %v576_v35, 0.0  ;;  %v583_v38 = vsel %vm1928_vm1, %v577_v36, 0.0 }
 0x12b   : > { %v585_v39 = vadd.f32 %v583_v38, %v582_v37  ;;  %v592_v40 = vmul.f32 %v582_v37, %v582_v37  ;;  %v593_v41 = vmul.f32 %v583_v38, %v583_v38 }
 0x12d   : > { %586 = vadd.xlane.f32.xlu1 %v585_v39  ;;  %v594_v42 = vadd.f32 %v593_v41, %v592_v40 }
 0x12f   : > { %595 = vadd.xlane.f32.xlu2 %v594_v42 }
 0x1a0   : > { %v587_v44 = vpop.xlane.xlu1 %586 }
 0x1a1   : > { %v588_v46 = vadd.f32 %v587_v44, %v584_v43 }
 0x1a2   : > { %v596_v47 = vpop.xlane.xlu2 %595 }
 0x1a3   : > { %590 = vst.msk [vmem:[#allocation2] sm:$0xff] %vm589_vm6, %v588_v46  ;;  %v597_v48 = vadd.f32 %v596_v47, %v591_v45 }
 0x1a5   : > { %598 = vst.msk [vmem:[#allocation3] sm:$0xff] %vm589_vm6, %v597_v48 }
 0x1a6 PF: > { %p599_p9 = scmp.eq.s32.totalorder %s1796_s30, 1 }
 0x1a7   : > { %v610_v61 = vld [vmem:[%s2102_s3] sm:$0xff] (%p599_p9)  ;;  %vm623_vm10 = vcmask (%p599_p9), 7168  }
 0x1a8   : > { %603 = sbr.rel (!%p599_p9) target bundleno = 460 (0x1cc), region = 76  ;;  %v625_v2 = vld [vmem:[%s2103_s4] sm:$0xff] (%p599_p9) }
 0x1aa   : > { %v604_v49 = vld [vmem:[#allocation2] sm:$0xff] (%p599_p9) }
 0x1ab   : > { %v605_v51 = vmul.f32 (%p599_p9), 0.03125, %v604_v49 }
 0x1ac   : > { %v606_v50 = vld [vmem:[#allocation3] sm:$0xff] (%p599_p9) }
 0x1ad   : > { %v607_v52 = vmul.f32 0.03125, %v606_v50  ;;  %v608_v53 = vmul.f32 %v605_v51, %v605_v51 }
 0x1af   : > { %v609_v54 = vsub.f32 %v607_v52, %v608_v53 }
 0x1b1   : > { %v611_v55 = vadd.f32 1e-05, %v609_v54 }
 0x1b3   : > { %1632 = vrsqrt.f32 %v611_v55  ;;  %vm618_vm7 = vweird.f32 %v611_v55 }
 0x1b9   : > { %v1633_v56 = vpop.eup %1632 }
 0x1ba   : > { %v613_v57 = vmul.f32 %v1633_v56, %v611_v55  ;;  %vm619_vm8 = vweird.f32 %v1633_v56 }
 0x1bb   : > { %vm620_vm9 = vmor %vm618_vm7, %vm619_vm8 }
 0x1bc   : > { %v614_v58 = vmul.f32 %v1633_v56, %v613_v57 }
 0x1be   : > { %v615_v59 = vmul.f32 0.5, %v614_v58 }
 0x1c0   : > { %v616_v60 = vsub.f32 1.5, %v615_v59 }
 0x1c2   : > { %v617_v62 = vmul.f32 %v1633_v56, %v616_v60 }
 0x1c4   : > { %v621_v63 = vsel %vm620_vm9, %v1633_v56, %v617_v62 }
 0x1c5   : > { %v622_v0 = vmul.f32 %v621_v63, %v610_v61 }
 0x1c7   : > { %624 = vst.msk [vmem:[#allocation6] sm:$0xff] %vm623_vm10, %v622_v0  ;;  %v626_v3 = vmul.f32 %v622_v0, %v605_v51 }
 0x1c9   : > { %v627_v5 = vsub.f32 %v625_v2, %v626_v3 }
 0x1cb   : > { %628 = vst.msk [vmem:[#allocation7] sm:$0xff] %vm623_vm10, %v627_v5 }
 0x1cc PF: > { %p1513_p10 = scmp.ne.s32.totalorder %s1796_s30, 1 }
 0x1cd   : > { %s1814_s15 = smov (!%p1513_p10), 1   ;;  %s1815_s16 = smov (!%p1513_p10), 127  }
 0x1ce   : > { %631 = sbr.rel (%p1513_p10) target bundleno = 1111 (0x457), region = 80 }
 0x1d3   : > { %v632_v6 = vld [vmem:[%s2099_s0] sm:$0xff]  ;;  %v633_v7 = vld [vmem:[%s2099_s0 + $0x8] sm:$0xff]  ;;  %v1816_v10 = vmov 0   ;;  %vm652_vm11 = vcmask 64512   ;;  %vm639_vm12 = vcmp.lt.s32.totalorder %v1924_v1, 1  ;;  %vm646_vm13 = vcmp.lt.s32.totalorder %v1924_v1, 127 }
 0x1d4   : > { %v1634_v8 = vpack.i.bf16 %v633_v7, %v632_v6  ;;  %671 = vmatpush.msra.mxu0 %v632_v6  ;;  %691 = vmatpush.msra.mxu1 %v633_v7  ;;  %v634_v9 = vld [vmem:[%s2101_s2] sm:$0xff]  ;;  %v651_v11 = vld [vmem:[#allocation10 + $0x8] sm:$0xff]  ;;  %v740_v24 = vld [vmem:[#allocation10 + $0x10] sm:$0xff]  ;;  %vm980_vm14 = vcmask 7168  }
 0x1d5   : > { %1644 = vset.pattern.permute.xlu1 %v1816_v10  ;;  %1645 = vset.pattern.permute.xlu2 %v1816_v10  ;;  %v793_v12 = vld [vmem:[#allocation6] sm:$0xff]  ;;  %v801_v13 = vld [vmem:[#allocation7] sm:$0xff]  ;;  %v830_v61 = vld [vmem:[#allocation13] sm:$0xff] }
 0x1d6   : > { %1635 = vrot.lane.b32.xlu0 %v1634_v8, %s1814_s15  ;;  %788 = vperm.xlu1 %1644, %v634_v9   ;;  %v817_v14 = vld [vmem:[%s2105_s6] sm:$0xff]  ;;  %v920_v55 = vld [vmem:[#allocation13 + $0x10] sm:$0xff] }
 0x1d7   : > { %1656 = vset.pattern.permute.xlu0 %v1816_v10  ;;  %1514 = vmatmul.msk.f32.vlgmr.msra.gmra.mxu0 %vm652_vm11, %v651_v11  ;;  %v649_v18 = vld [vmem:[#allocation10] sm:$0xff] }
 0x1d8   : > { %1515 = vmatmul.msk.f32.vlgmr.msra.gmra.mxu1 %vm652_vm11, %v651_v11  ;;  %804 = vperm.xlu2 %1645, %v801_v13   ;;  %v832_v51 = vld [vmem:[#allocation13 + $0x8] sm:$0xff] }
 0x1de   : > { %1640 = vrot.lane.b32.xlu0 %v1634_v8, %s1815_s16  ;;  %796 = vperm.xlu1 %1644, %v793_v12  }
 0x1e6   : > { %968 = vperm.xlu1 %1644, %v817_v14  }
 0x232   : > { %v805_v41 = vpop.permute.xlu2 %804 }
 0x248   : > { %v1636_v15 = vpop.permute.xlu0 %1635  ;;  %v789_v29 = vpop.permute.xlu1 %788 }
 0x249   : > { %v1638_v16 = vunpack.i.h.bf16 %v1636_v15  ;;  %v1637_v17 = vunpack.i.l.bf16 %v1636_v15 }
 0x24b   : > { %v641_v19 = vsel %vm639_vm12, %v1638_v16, %v1637_v17  ;;  %v640_v20 = vsel %vm639_vm12, %v1637_v17, %v1638_v16 }
 0x24c   : > { %714 = vmatpush.msra.mxu2 %v641_v19  ;;  %734 = vmatpush.msra.mxu3 %v640_v20 }
 0x24d   : > { %1516 = vmatmul.msk.f32.vlgmr.msra.gmra.mxu2 %vm652_vm11, %v649_v18  ;;  %1517 = vmatmul.msk.f32.vlgmr.msra.gmra.mxu3 %vm652_vm11, %v649_v18 }
 0x250   : > { %v1641_v21 = vpop.permute.xlu0 %1640  ;;  %v797_v40 = vpop.permute.xlu1 %796 }
 0x251   : > { %v1643_v22 = vunpack.i.h.bf16 %v1641_v21  ;;  %v1642_v23 = vunpack.i.l.bf16 %v1641_v21  ;;  %v975_v21 = vld [vmem:[#allocation4] sm:$0xff] }
 0x253   : > { %v647_v25 = vsel %vm646_vm13, %v1642_v23, %v1643_v22  ;;  %v648_v26 = vsel %vm646_vm13, %v1643_v22, %v1642_v23  ;;  %v982_v23 = vld [vmem:[#allocation5] sm:$0xff] }
 0x254   : > { %759 = vmatpush.msrb.mxu0 %v647_v25  ;;  %779 = vmatpush.msrb.mxu1 %v648_v26  ;;  %v673_v27 = vpop.f32.mrf.mxu0 }
 0x255   : > { %1518 = vmatmul.msk.f32.vlgmr.msrb.gmra.mxu0 %vm652_vm11, %v740_v24  ;;  %1519 = vmatmul.msk.f32.vlgmr.msrb.gmra.mxu1 %vm652_vm11, %v740_v24  ;;  %v693_v28 = vpop.f32.mrf.mxu1 }
 0x258   : > { %v969_v12 = vpop.permute.xlu1 %968 }
 0x2d0   : > { %v716_v30 = vpop.f32.mrf.mxu2  ;;  %v736_v31 = vpop.f32.mrf.mxu3 }
 0x2d1   : > { %v717_v32 = vadd.f32 %v716_v30, %v673_v27  ;;  %v737_v33 = vadd.f32 %v736_v31, %v693_v28 }
 0x2d2   : > { %v761_v34 = vpop.f32.mrf.mxu0  ;;  %v781_v35 = vpop.f32.mrf.mxu1 }
 0x2d3   : > { %v784_v36 = vadd.f32 %v761_v34, %v717_v32  ;;  %v785_v37 = vadd.f32 %v781_v35, %v737_v33 }
 0x2d5   : > { %v791_v38 = vadd.f32 %v789_v29, %v784_v36  ;;  %v792_v39 = vadd.f32 %v789_v29, %v785_v37 }
 0x2d7   : > { %v799_v42 = vmul.f32 %v797_v40, %v791_v38  ;;  %v800_v43 = vmul.f32 %v797_v40, %v792_v39 }
 0x2d9   : > { %v807_v44 = vadd.f32 %v805_v41, %v799_v42  ;;  %v808_v45 = vadd.f32 %v805_v41, %v800_v43 }
 0x2db   : > { %v809_v46 = vmax.f32 %v807_v44, 0.0  ;;  %v810_v47 = vmax.f32 %v808_v45, 0.0 }
 0x2dd   : > { %v815_v48 = vsel %vm396_vm0, %v809_v46, 0.0  ;;  %1520 = vmatpush.msk.msrb.mxu2 %vm396_vm0, %v809_v46  ;;  %v816_v49 = vsel %vm1928_vm1, %v810_v47, 0.0  ;;  %1522 = vmatpush.msk.msrb.mxu3 %vm1928_vm1, %v810_v47 }
 0x2de   : > { %v1651_v50 = vpack.i.bf16 %v816_v49, %v815_v48  ;;  %1521 = vmatmul.msk.f32.vlgmr.msrb.gmra.mxu2 %vm652_vm11, %v832_v51  ;;  %1523 = vmatmul.msk.f32.vlgmr.msrb.gmra.mxu3 %vm652_vm11, %v832_v51 }
 0x2e0   : > { %1652 = vrot.lane.b32.xlu0 %v1651_v50, %s1814_s15  ;;  %1647 = vrot.lane.b32.xlu2 %v1651_v50, %s1815_s16 }
 0x33a   : > { %v1648_v52 = vpop.permute.xlu2 %1647 }
 0x33b   : > { %v1650_v53 = vunpack.i.h.bf16 %v1648_v52  ;;  %v1649_v54 = vunpack.i.l.bf16 %v1648_v52 }
 0x33d   : > { %v828_v56 = vsel %vm646_vm13, %v1649_v54, %v1650_v53  ;;  %v829_v57 = vsel %vm646_vm13, %v1650_v53, %v1649_v54 }
 0x33e   : > { %939 = vmatpush.msra.mxu2 %v828_v56  ;;  %959 = vmatpush.msra.mxu3 %v829_v57 }
 0x33f   : > { %1526 = vmatmul.msk.f32.vlgmr.msra.gmra.mxu2 %vm652_vm11, %v920_v55  ;;  %1527 = vmatmul.msk.f32.vlgmr.msra.gmra.mxu3 %vm652_vm11, %v920_v55 }
 0x352   : > { %v1653_v58 = vpop.permute.xlu0 %1652 }
 0x353   : > { %v1655_v59 = vunpack.i.h.bf16 %v1653_v58  ;;  %v1654_v60 = vunpack.i.l.bf16 %v1653_v58 }
 0x355   : > { %v823_v62 = vsel %vm639_vm12, %v1655_v59, %v1654_v60  ;;  %v822_v63 = vsel %vm639_vm12, %v1654_v60, %v1655_v59 }
 0x356   : > { %894 = vmatpush.msra.mxu0 %v823_v62  ;;  %914 = vmatpush.msra.mxu1 %v822_v63 }
 0x357   : > { %1524 = vmatmul.msk.f32.vlgmr.msra.gmra.mxu0 %vm652_vm11, %v830_v61  ;;  %1525 = vmatmul.msk.f32.vlgmr.msra.gmra.mxu1 %vm652_vm11, %v830_v61 }
 0x361   : > { %v853_v0 = vpop.f32.mrf.mxu2  ;;  %v873_v2 = vpop.f32.mrf.mxu3 }
 0x3c2   : > { %v941_v3 = vpop.f32.mrf.mxu2  ;;  %v961_v5 = vpop.f32.mrf.mxu3 }
 0x3d4   : > { %v896_v6 = vpop.f32.mrf.mxu0  ;;  %v916_v7 = vpop.f32.mrf.mxu1 }
 0x3d5   : > { %v897_v8 = vadd.f32 %v896_v6, %v853_v0  ;;  %v917_v9 = vadd.f32 %v916_v7, %v873_v2 }
 0x3d7   : > { %v964_v10 = vadd.f32 %v941_v3, %v897_v8  ;;  %v965_v11 = vadd.f32 %v961_v5, %v917_v9 }
 0x3d9   : > { %v971_v13 = vadd.f32 %v969_v12, %v964_v10  ;;  %v972_v14 = vadd.f32 %v969_v12, %v965_v11 }
 0x3db   : > { %v973_v15 = vsel %vm396_vm0, %v971_v13, 0.0  ;;  %v974_v16 = vsel %vm1928_vm1, %v972_v14, 0.0 }
 0x3dc   : > { %v976_v17 = vadd.f32 %v974_v16, %v973_v15  ;;  %v983_v18 = vmul.f32 %v973_v15, %v973_v15  ;;  %v984_v19 = vmul.f32 %v974_v16, %v974_v16 }
 0x3de   : > { %977 = vadd.xlane.f32.xlu2 %v976_v17  ;;  %v985_v20 = vadd.f32 %v984_v19, %v983_v18 }
 0x3e0   : > { %986 = vadd.xlane.f32.xlu0 %v985_v20 }
 0x451   : > { %v978_v22 = vpop.xlane.xlu2 %977 }
 0x452   : > { %v979_v24 = vadd.f32 %v978_v22, %v975_v21 }
 0x453   : > { %v987_v25 = vpop.xlane.xlu0 %986 }
 0x454   : > { %981 = vst.msk [vmem:[#allocation4] sm:$0xff] %vm980_vm14, %v979_v24  ;;  %v988_v26 = vadd.f32 %v987_v25, %v982_v23 }
 0x456   : > { %989 = vst.msk [vmem:[#allocation5] sm:$0xff] %vm980_vm14, %v988_v26 }
 0x457 PF: > { %p990_p11 = scmp.eq.s32.totalorder %s1796_s30, 2 }
 0x458   : > { %v1001_v39 = vld [vmem:[%s2106_s7] sm:$0xff] (%p990_p11)  ;;  %vm1014_vm4 = vcmask (%p990_p11), 7168  }
 0x459   : > { %994 = sbr.rel (!%p990_p11) target bundleno = 1149 (0x47d), region = 84  ;;  %v1016_v43 = vld [vmem:[%s2107_s8] sm:$0xff] (%p990_p11) }
 0x45b   : > { %v995_v27 = vld [vmem:[#allocation4] sm:$0xff] (%p990_p11) }
 0x45c   : > { %v996_v29 = vmul.f32 (%p990_p11), 0.03125, %v995_v27 }
 0x45d   : > { %v997_v28 = vld [vmem:[#allocation5] sm:$0xff] (%p990_p11) }
 0x45e   : > { %v998_v30 = vmul.f32 0.03125, %v997_v28  ;;  %v999_v31 = vmul.f32 %v996_v29, %v996_v29 }
 0x460   : > { %v1000_v32 = vsub.f32 %v998_v30, %v999_v31 }
 0x462   : > { %v1002_v33 = vadd.f32 1e-05, %v1000_v32 }
 0x464   : > { %1657 = vrsqrt.f32 %v1002_v33  ;;  %vm1009_vm15 = vweird.f32 %v1002_v33 }
 0x46a   : > { %v1658_v34 = vpop.eup %1657 }
 0x46b   : > { %v1004_v35 = vmul.f32 %v1658_v34, %v1002_v33  ;;  %vm1010_vm2 = vweird.f32 %v1658_v34 }
 0x46c   : > { %vm1011_vm3 = vmor %vm1009_vm15, %vm1010_vm2 }
 0x46d   : > { %v1005_v36 = vmul.f32 %v1658_v34, %v1004_v35 }
 0x46f   : > { %v1006_v37 = vmul.f32 0.5, %v1005_v36 }
 0x471   : > { %v1007_v38 = vsub.f32 1.5, %v1006_v37 }
 0x473   : > { %v1008_v40 = vmul.f32 %v1658_v34, %v1007_v38 }
 0x475   : > { %v1012_v41 = vsel %vm1011_vm3, %v1658_v34, %v1008_v40 }
 0x476   : > { %v1013_v42 = vmul.f32 %v1012_v41, %v1001_v39 }
 0x478   : > { %1015 = vst.msk [vmem:[#allocation8] sm:$0xff] %vm1014_vm4, %v1013_v42  ;;  %v1017_v44 = vmul.f32 %v1013_v42, %v996_v29 }
 0x47a   : > { %v1018_v45 = vsub.f32 %v1016_v43, %v1017_v44 }
 0x47c   : > { %1019 = vst.msk [vmem:[#allocation9] sm:$0xff] %vm1014_vm4, %v1018_v45 }
 0x47d PF: > { %p1529_p12 = scmp.ne.s32.totalorder %s1796_s30, 2 }
 0x47e   : > { %s1817_s29 = smov (!%p1529_p12), 1   ;;  %s1818_s15 = smov (!%p1529_p12), 127  }
 0x47f   : > { %1022 = sbr.rel (%p1529_p12) target bundleno = 1684 (0x694), region = 88 }
 0x484   : > { %v1023_v46 = vld [vmem:[%s2099_s0] sm:$0xff]  ;;  %v1024_v47 = vld [vmem:[%s2099_s0 + $0x8] sm:$0xff]  ;;  %v1819_v50 = vmov 0   ;;  %vm1043_vm5 = vcmask 64512   ;;  %vm1030_vm6 = vcmp.lt.s32.totalorder %v1924_v1, 1  ;;  %vm1037_vm7 = vcmp.lt.s32.totalorder %v1924_v1, 127 }
 0x485   : > { %v1659_v48 = vpack.i.bf16 %v1024_v47, %v1023_v46  ;;  %1062 = vmatpush.msra.mxu0 %v1023_v46  ;;  %1082 = vmatpush.msra.mxu1 %v1024_v47  ;;  %v1025_v49 = vld [vmem:[%s2101_s2] sm:$0xff]  ;;  %v1042_v51 = vld [vmem:[#allocation10 + $0x8] sm:$0xff]  ;;  %v1131_v0 = vld [vmem:[#allocation10 + $0x10] sm:$0xff] }
 0x486   : > { %1669 = vset.pattern.permute.xlu1 %v1819_v50  ;;  %1670 = vset.pattern.permute.xlu2 %v1819_v50  ;;  %v1184_v52 = vld [vmem:[#allocation6] sm:$0xff]  ;;  %v1192_v53 = vld [vmem:[#allocation7] sm:$0xff]  ;;  %v1364_v29 = vld [vmem:[#allocation8] sm:$0xff] }
 0x487   : > { %1660 = vrot.lane.b32.xlu0 %v1659_v48, %s1817_s29  ;;  %1179 = vperm.xlu1 %1669, %v1025_v49   ;;  %v1208_v54 = vld [vmem:[%s2105_s6] sm:$0xff]  ;;  %v1372_v31 = vld [vmem:[#allocation9] sm:$0xff]  ;;  %v1311_v35 = vld [vmem:[#allocation13 + $0x10] sm:$0xff] }
 0x488   : > { %1681 = vset.pattern.permute.xlu0 %v1819_v50  ;;  %1530 = vmatmul.msk.f32.vlgmr.msra.gmra.mxu0 %vm1043_vm5, %v1042_v51  ;;  %v1040_v58 = vld [vmem:[#allocation10] sm:$0xff]  ;;  %v1221_v40 = vld [vmem:[#allocation13] sm:$0xff] }
 0x489   : > { %1531 = vmatmul.msk.f32.vlgmr.msra.gmra.mxu1 %vm1043_vm5, %v1042_v51  ;;  %1195 = vperm.xlu2 %1670, %v1192_v53   ;;  %v1223_v30 = vld [vmem:[#allocation13 + $0x8] sm:$0xff] }
 0x48f   : > { %1665 = vrot.lane.b32.xlu0 %v1659_v48, %s1818_s15  ;;  %1187 = vperm.xlu1 %1669, %v1184_v52  }
 0x497   : > { %1359 = vperm.xlu1 %1669, %v1208_v54  }
 0x4e3   : > { %v1196_v19 = vpop.permute.xlu2 %1195 }
 0x4f9   : > { %v1661_v55 = vpop.permute.xlu0 %1660  ;;  %v1180_v7 = vpop.permute.xlu1 %1179 }
 0x4fa   : > { %v1663_v56 = vunpack.i.h.bf16 %v1661_v55  ;;  %v1662_v57 = vunpack.i.l.bf16 %v1661_v55 }
 0x4fc   : > { %v1032_v59 = vsel %vm1030_vm6, %v1663_v56, %v1662_v57  ;;  %v1031_v60 = vsel %vm1030_vm6, %v1662_v57, %v1663_v56 }
 0x4fd   : > { %1105 = vmatpush.msra.mxu2 %v1032_v59  ;;  %1125 = vmatpush.msra.mxu3 %v1031_v60 }
 0x4fe   : > { %1532 = vmatmul.msk.f32.vlgmr.msra.gmra.mxu2 %vm1043_vm5, %v1040_v58  ;;  %1533 = vmatmul.msk.f32.vlgmr.msra.gmra.mxu3 %vm1043_vm5, %v1040_v58 }
 0x501   : > { %v1666_v61 = vpop.permute.xlu0 %1665  ;;  %v1188_v18 = vpop.permute.xlu1 %1187 }
 0x502   : > { %v1668_v62 = vunpack.i.h.bf16 %v1666_v61  ;;  %v1667_v63 = vunpack.i.l.bf16 %v1666_v61 }
 0x504   : > { %v1038_v2 = vsel %vm1037_vm7, %v1667_v63, %v1668_v62  ;;  %v1039_v3 = vsel %vm1037_vm7, %v1668_v62, %v1667_v63 }
 0x505   : > { %1150 = vmatpush.msrb.mxu0 %v1038_v2  ;;  %1170 = vmatpush.msrb.mxu1 %v1039_v3  ;;  %v1064_v5 = vpop.f32.mrf.mxu0 }
 0x506   : > { %1534 = vmatmul.msk.f32.vlgmr.msrb.gmra.mxu0 %vm1043_vm5, %v1131_v0  ;;  %1535 = vmatmul.msk.f32.vlgmr.msrb.gmra.mxu1 %vm1043_vm5, %v1131_v0  ;;  %v1084_v6 = vpop.f32.mrf.mxu1 }
 0x509   : > { %v1360_v53 = vpop.permute.xlu1 %1359 }
 0x581   : > { %v1107_v8 = vpop.f32.mrf.mxu2  ;;  %v1127_v9 = vpop.f32.mrf.mxu3 }
 0x582   : > { %v1108_v10 = vadd.f32 %v1107_v8, %v1064_v5  ;;  %v1128_v11 = vadd.f32 %v1127_v9, %v1084_v6 }
 0x583   : > { %v1152_v12 = vpop.f32.mrf.mxu0  ;;  %v1172_v13 = vpop.f32.mrf.mxu1 }
 0x584   : > { %v1175_v14 = vadd.f32 %v1152_v12, %v1108_v10  ;;  %v1176_v15 = vadd.f32 %v1172_v13, %v1128_v11 }
 0x586   : > { %v1182_v16 = vadd.f32 %v1180_v7, %v1175_v14  ;;  %v1183_v17 = vadd.f32 %v1180_v7, %v1176_v15 }
 0x588   : > { %v1190_v20 = vmul.f32 %v1188_v18, %v1182_v16  ;;  %v1191_v21 = vmul.f32 %v1188_v18, %v1183_v17 }
 0x58a   : > { %v1198_v22 = vadd.f32 %v1196_v19, %v1190_v20  ;;  %v1199_v23 = vadd.f32 %v1196_v19, %v1191_v21 }
 0x58c   : > { %v1200_v24 = vmax.f32 %v1198_v22, 0.0  ;;  %v1201_v25 = vmax.f32 %v1199_v23, 0.0 }
 0x58e   : > { %v1206_v26 = vsel %vm396_vm0, %v1200_v24, 0.0  ;;  %1536 = vmatpush.msk.msrb.mxu2 %vm396_vm0, %v1200_v24  ;;  %v1207_v27 = vsel %vm1928_vm1, %v1201_v25, 0.0  ;;  %1538 = vmatpush.msk.msrb.mxu3 %vm1928_vm1, %v1201_v25 }
 0x58f   : > { %v1676_v28 = vpack.i.bf16 %v1207_v27, %v1206_v26  ;;  %1537 = vmatmul.msk.f32.vlgmr.msrb.gmra.mxu2 %vm1043_vm5, %v1223_v30  ;;  %1539 = vmatmul.msk.f32.vlgmr.msrb.gmra.mxu3 %vm1043_vm5, %v1223_v30 }
 0x591   : > { %1677 = vrot.lane.b32.xlu0 %v1676_v28, %s1817_s29  ;;  %1672 = vrot.lane.b32.xlu2 %v1676_v28, %s1818_s15 }
 0x599   : > { %1367 = vperm.xlu2 %1670, %v1364_v29   ;;  %1375 = vperm.xlu0 %1681, %v1372_v31  }
 0x5eb   : > { %v1673_v32 = vpop.permute.xlu2 %1672 }
 0x5ec   : > { %v1675_v33 = vunpack.i.h.bf16 %v1673_v32  ;;  %v1674_v34 = vunpack.i.l.bf16 %v1673_v32 }
 0x5ee   : > { %v1219_v4 = vsel %vm1037_vm7, %v1674_v34, %v1675_v33  ;;  %v1220_v36 = vsel %vm1037_vm7, %v1675_v33, %v1674_v34 }
 0x5ef   : > { %1330 = vmatpush.msra.mxu2 %v1219_v4  ;;  %1350 = vmatpush.msra.mxu3 %v1220_v36 }
 0x5f0   : > { %1542 = vmatmul.msk.f32.vlgmr.msra.gmra.mxu2 %vm1043_vm5, %v1311_v35  ;;  %1543 = vmatmul.msk.f32.vlgmr.msra.gmra.mxu3 %vm1043_vm5, %v1311_v35 }
 0x5f3   : > { %v1368_v55 = vpop.permute.xlu2 %1367 }
 0x603   : > { %v1678_v37 = vpop.permute.xlu0 %1677 }
 0x604   : > { %v1680_v38 = vunpack.i.h.bf16 %v1678_v37  ;;  %v1679_v39 = vunpack.i.l.bf16 %v1678_v37 }
 0x606   : > { %v1214_v41 = vsel %vm1030_vm6, %v1680_v38, %v1679_v39  ;;  %v1213_v42 = vsel %vm1030_vm6, %v1679_v39, %v1680_v38 }
 0x607   : > { %1285 = vmatpush.msra.mxu0 %v1214_v41  ;;  %1305 = vmatpush.msra.mxu1 %v1213_v42 }
 0x608   : > { %1540 = vmatmul.msk.f32.vlgmr.msra.gmra.mxu0 %vm1043_vm5, %v1221_v40  ;;  %1541 = vmatmul.msk.f32.vlgmr.msra.gmra.mxu1 %vm1043_vm5, %v1221_v40 }
 0x60b   : > { %v1376_v56 = vpop.permute.xlu0 %1375 }
 0x612   : > { %v1244_v43 = vpop.f32.mrf.mxu2  ;;  %v1264_v44 = vpop.f32.mrf.mxu3 }
 0x673   : > { %v1332_v45 = vpop.f32.mrf.mxu2  ;;  %v1352_v46 = vpop.f32.mrf.mxu3 }
 0x685   : > { %v1287_v47 = vpop.f32.mrf.mxu0  ;;  %v1307_v48 = vpop.f32.mrf.mxu1 }
 0x686   : > { %v1288_v49 = vadd.f32 %v1287_v47, %v1244_v43  ;;  %v1308_v50 = vadd.f32 %v1307_v48, %v1264_v44 }
 0x688   : > { %v1355_v51 = vadd.f32 %v1332_v45, %v1288_v49  ;;  %v1356_v52 = vadd.f32 %v1352_v46, %v1308_v50 }
 0x68a   : > { %v1362_v54 = vadd.f32 %v1360_v53, %v1355_v51  ;;  %v1363_v1 = vadd.f32 %v1360_v53, %v1356_v52 }
 0x68c   : > { %v1370_v57 = vmul.f32 %v1368_v55, %v1362_v54  ;;  %v1371_v58 = vmul.f32 %v1368_v55, %v1363_v1 }
 0x68e   : > { %v1378_v59 = vadd.f32 %v1376_v56, %v1370_v57  ;;  %v1379_v60 = vadd.f32 %v1376_v56, %v1371_v58 }
 0x690   : > { %v1380_v61 = vmax.f32 %v1378_v59, 0.0  ;;  %v1381_v62 = vmax.f32 %v1379_v60, 0.0 }
 0x692   : > { %1382 = vst [vmem:[#allocation15] sm:$0xff] %v1380_v61 }
 0x693   : > { %1383 = vst [vmem:[#allocation15 + $0x8] sm:$0xff] %v1381_v62 }
 0x694 PF: > { %p1578_p13 = scmp.eq.s32.totalorder %s1495_s12, 2  ;;  %s1402_s21 = sshll.u32 %s2108_s9, 4  ;;  %s1403_s21 = int_to_ptr.hbm [resolvable:$true] %s1402_s21 }
 0x695   : > { %s1820_s22 = smov [#allocation15]  }
 0x696   : > { %s1400_s23 = sshll.u32 %s1820_s22, 4  ;;  %s1401_s23 = int_to_ptr.vmem [resolvable:$true] %s1400_s23 }
 0x697   : > { %1560 = dma.vmem_to_hbm [thread:$0]  (%p1578_p13), %s1401_s23, 256, %s1403_s21, [#allocation12]  }
 0x698 PF: > { %p1579_p0 = scmp.ge.s32.totalorder %s1804_s11, 2  ;;  %p1580_p1 = scmp.eq.s32.totalorder %s1496_s13, 2 }
 0x69a   : > { %p1571_p2 = pnand %p1580_p1, %p1579_p0 }
 0x69c   : > { %p1572_p3 = pneg %p1571_p2 }
 0x69e   : > { %1791 = dma.done.wait (%p1572_p3), [#allocation12], 256  }
 0x69f   : > { %1793 = vsyncadd (%p1572_p3), [#allocation12], 4294967040  ;;  %s24_s11 = sadd.s32 1, %s1804_s11   ;;  %s2113_s30 = smov %s1800_s10 }
 0x6a0   : > { %p21_p4 = scmp.ge.s32.totalorder %s24_s11, 5   ;;  %s2114_s10 = smov %s2116_s14 }
 0x6a2   :  { %23 = sbr.rel (!%p21_p4) target bundleno = 5 (0x5), region = 134 }
 0x6a7   :  { %1421 = vsyncpa [#allocation11], 1 }
 0x6a8   :  { %1423 = vsyncpa [#allocation11 + $0x1], 1 }
 0x6a9   :  { %1424 = vsyncpa [#allocation14], 1 }
 0x6aa   :  { %1425 = vsyncpa [#allocation12], 1 }
 0x6ab   :  { %1427 = vsyncpa [#allocation12 + $0x1], 1 }

</bundles_post_ra>
